<compile_context>
chip_gen: v6e
topology: v6e:2x2x1
jax: 0.10.0
libtpu: 0.0.40
codegen_flags: <defaults>
</compile_context>

<pallas_src>
import functools
import math

import jax
import jax.numpy as jnp
from jax.experimental import pallas as pl
from jax.experimental.pallas import tpu as pltpu


def _flash_attn_kernel(q_ref, k_ref, v_ref, o_ref, q_s, m_s, l_s, acc, *, scale):
    # q_ref: (1, bq, D)   k_ref/v_ref: (1, bk, D)   o_ref: (1, bq, D)
    # scratch: q_s (bq, D) bf16, m_s/l_s (bq, 1) f32, acc (bq, D) f32
    ki = pl.program_id(2)

    @pl.when(ki == 0)
    def _init():
        # Cache the scaled Q tile once per (head, q-block); reused every kv step.
        q_s[...] = (q_ref[0].astype(jnp.float32) * scale).astype(q_s.dtype)
        m_s[...] = jnp.full(m_s.shape, -1e30, dtype=m_s.dtype)
        l_s[...] = jnp.zeros(l_s.shape, dtype=l_s.dtype)
        acc[...] = jnp.zeros(acc.shape, dtype=acc.dtype)

    k = k_ref[0]
    v = v_ref[0]

    # Q @ K^T without materializing a transpose: contract both last dims (MXU,
    # bf16 operands, f32 accumulation).
    s = jax.lax.dot_general(
        q_s[...], k,
        dimension_numbers=(((1,), (1,)), ((), ())),
        preferred_element_type=jnp.float32,
    )                                                         # (bq, bk) f32

    m_prev = m_s[...]                                         # (bq, 1)
    m_new = jnp.maximum(m_prev, jnp.max(s, axis=-1, keepdims=True))
    alpha = jnp.exp(m_prev - m_new)                           # rescale factor
    p = jnp.exp(s - m_new)                                    # (bq, bk) f32

    l_s[...] = alpha * l_s[...] + jnp.sum(p, axis=-1, keepdims=True)
    acc[...] = alpha * acc[...] + jnp.dot(
        p.astype(v.dtype), v, preferred_element_type=jnp.float32)
    m_s[...] = m_new

    @pl.when(ki == pl.num_programs(2) - 1)
    def _finalize():
        inv_l = pl.reciprocal(l_s[...], approx=True)          # EUP reciprocal
        o_ref[0] = (acc[...] * inv_l).astype(o_ref.dtype)


def _pick_block(total, cap):
    """Largest divisor of `total` that is <= cap and a multiple of 8 (or total)."""
    cap = max(1, min(cap, total))
    for b in range(cap, 0, -1):
        if total % b == 0 and (b % 8 == 0 or b == total):
            return b
    return total


def sdpa_with_mask(query, key, value, attn_mask, *, block_q=512, block_k=512):
    """query: (B,H,Lq,D)  key/value: (B,H,Lk,D)  attn_mask: (B,1,Lq,Lk)."""
    B, H, Lq, D = query.shape
    Lk = key.shape[2]
    assert key.shape == (B, H, Lk, D) and value.shape == (B, H, Lk, D)
    assert attn_mask.shape == (B, 1, Lq, Lk)

    bq = _pick_block(Lq, block_q)
    bk = _pick_block(Lk, block_k)
    nq = Lq // bq
    nk = Lk // bk

    # bf16 operands for the MXU; accumulation stays f32 inside the kernel.
    compute_dtype = jnp.bfloat16
    q = query.reshape(B * H, Lq, D).astype(compute_dtype)
    k = key.reshape(B * H, Lk, D).astype(compute_dtype)
    v = value.reshape(B * H, Lk, D).astype(compute_dtype)

    grid = (B * H, nq, nk)
    kernel = functools.partial(_flash_attn_kernel, scale=1.0 / math.sqrt(D))

    in_bytes = jnp.dtype(compute_dtype).itemsize
    cost = pl.CostEstimate(
        flops=4 * B * H * Lq * Lk * D,                       # QK^T + P@V
        transcendentals=B * H * Lq * Lk,                     # exp
        bytes_accessed=(B * H * Lq * D) * in_bytes           # Q read once
        + 2 * nq * (B * H * Lk * D) * in_bytes               # K, V re-read per q-block
        + (B * H * Lq * D) * 4,                              # f32 output write
    )

    attn_v = pl.pallas_call(
        kernel,
        out_shape=jax.ShapeDtypeStruct((B * H, Lq, D), jnp.float32),
        grid_spec=pltpu.PrefetchScalarGridSpec(
            num_scalar_prefetch=0,
            grid=grid,
            in_specs=[
                pl.BlockSpec((1, bq, D), lambda i, qi, ki: (i, qi, 0)),
                pl.BlockSpec((1, bk, D), lambda i, qi, ki: (i, ki, 0)),
                pl.BlockSpec((1, bk, D), lambda i, qi, ki: (i, ki, 0)),
            ],
            out_specs=pl.BlockSpec((1, bq, D), lambda i, qi, ki: (i, qi, 0)),
            scratch_shapes=[
                pltpu.VMEM((bq, D), compute_dtype),   # scaled Q cache
                pltpu.VMEM((bq, 1), jnp.float32),     # running max
                pltpu.VMEM((bq, 1), jnp.float32),     # running denom
                pltpu.VMEM((bq, D), jnp.float32),     # unnormalized p@V acc
            ],
        ),
        compiler_params=pltpu.CompilerParams(
            dimension_semantics=("parallel", "parallel", "arbitrary"),
        ),
        cost_estimate=cost,
    )(q, k, v)

    attn_v = attn_v.reshape(B, H, Lq, D)

    # Post-softmax mask term hoisted out of the kernel:
    #   (mask + softmax(qk)) @ V == mask @ V + softmax(qk) @ V
    # Computed as a single lane-dense f32 batched matmul (N = H*D) so the mask
    # is streamed from HBM once (not once per head).
    v_flat = jnp.swapaxes(value, 1, 2).reshape(B, Lk, H * D)            # (B, Lk, H*D)
    mask_v = jnp.einsum("bqk,bkn->bqn", attn_mask[:, 0], v_flat,
                        precision="highest")                            # (B, Lq, H*D)
    mask_v = mask_v.reshape(B, Lq, H, D).transpose(0, 2, 1, 3)          # (B, H, Lq, D)

    return (mask_v + attn_v).astype(query.dtype)


def _reference(query, key, value, attn_mask):
    scale = 1.0 / math.sqrt(query.shape[-1])
    s = jnp.einsum("bhqd,bhkd->bhqk", query, key, precision="highest") * scale
    attn = jax.nn.softmax(s, axis=-1)
    # dropout(p=0.1, train=False) is the identity
    return jnp.einsum("bhqk,bhkd->bhqd", attn_mask + attn, value,
                      precision="highest")


if __name__ == "__main__":
    # Small shapes consistent with the module's forward (Lq != Lk like the
    # original 512 vs 768, scaled down; mask broadcast over heads).
    B, H, Lq, Lk, D = 1, 4, 256, 384, 64

    root = jax.random.PRNGKey(0)
    kq, kk, kv, km = jax.random.split(root, 4)
    query = jax.random.normal(kq, (B, H, Lq, D), dtype=jnp.float32)
    key_t = jax.random.normal(kk, (B, H, Lk, D), dtype=jnp.float32)
    value = jax.random.normal(kv, (B, H, Lk, D), dtype=jnp.float32)
    attn_mask = jax.random.normal(km, (B, 1, Lq, Lk), dtype=jnp.float32)

    # block_q/block_k chosen so the online-softmax accumulation runs over
    # multiple q- and kv-blocks (nq=2, nk=3) at this small test size.
    out = sdpa_with_mask(query, key_t, value, attn_mask,
                         block_q=128, block_k=128)
    out = jax.block_until_ready(out)

    ref = _reference(query, key_t, value, attn_mask)
    assert out.shape == (B, H, Lq, D)
    max_err = float(jnp.max(jnp.abs(out - ref)))
    # Tolerance sized for bf16 MXU operands (QK^T and P@V); mask@V is f32.
    assert jnp.allclose(out, ref, atol=5e-2, rtol=1e-2), max_err

    print("KERNEL_OK")
</pallas_src>

<mosaic_0001>
module attributes {stable_mosaic.version = 11 : i64} {
  func.func @_flash_attn_kernel(%arg0: i32, %arg1: i32, %arg2: i32, %arg3: memref<1x128x64xbf16, #tpu.memory_space<vmem>>, %arg4: memref<1x128x64xbf16, #tpu.memory_space<vmem>>, %arg5: memref<1x128x64xbf16, #tpu.memory_space<vmem>>, %arg6: memref<1x128x64xf32, #tpu.memory_space<vmem>>, %arg7: memref<128x64xbf16, #tpu.memory_space<vmem>>, %arg8: memref<128x1xf32, #tpu.memory_space<vmem>>, %arg9: memref<128x1xf32, #tpu.memory_space<vmem>>, %arg10: memref<128x64xf32, #tpu.memory_space<vmem>>) attributes {dimension_semantics = [#tpu.dimension_semantics<parallel>, #tpu.dimension_semantics<parallel>, #tpu.dimension_semantics<arbitrary>], iteration_bounds = array<i64: 4, 2, 3>, scalar_prefetch = 0 : i64, scratch_operands = 4 : i64, tpu.core_type = #tpu.core_type<tc>, window_params = [{transform_indices = @transform_0, window_bounds = array<i64: 1, 128, 64>}, {transform_indices = @transform_1, window_bounds = array<i64: 1, 128, 64>}, {transform_indices = @transform_2, window_bounds = array<i64: 1, 128, 64>}, {transform_indices = @transform_3, window_bounds = array<i64: 1, 128, 64>}]} {
    %c0_i32 = arith.constant 0 : i32
    %0 = arith.cmpi eq, %arg2, %c0_i32 : i32
    %1 = arith.extui %0 : i1 to i32
    %c0_i32_0 = arith.constant 0 : i32
    %2 = arith.cmpi ne, %1, %c0_i32_0 : i32
    scf.if %2 {
      %c0_24 = arith.constant 0 : index
      %c0_25 = arith.constant 0 : index
      %c0_26 = arith.constant 0 : index
      %35 = vector.load %arg3[%c0_24, %c0_25, %c0_26] : memref<1x128x64xbf16, #tpu.memory_space<vmem>>, vector<1x128x64xbf16>
      %36 = vector.shape_cast %35 : vector<1x128x64xbf16> to vector<128x64xbf16>
      %37 = arith.extf %36 : vector<128x64xbf16> to vector<128x64xf32>
      %cst_27 = arith.constant 1.250000e-01 : f32
      %38 = vector.broadcast %cst_27 : f32 to vector<128x64xf32>
      %39 = arith.mulf %37, %38 : vector<128x64xf32>
      %40 = arith.truncf %39 : vector<128x64xf32> to vector<128x64xbf16>
      %c0_28 = arith.constant 0 : index
      %c0_29 = arith.constant 0 : index
      %41 = vector.load %arg7[%c0_28, %c0_29] : memref<128x64xbf16, #tpu.memory_space<vmem>>, vector<128x64xbf16>
      tpu.vector_store %arg7[%c0_28, %c0_29], %40 {strides = array<i32>} : memref<128x64xbf16, #tpu.memory_space<vmem>>, vector<128x64xbf16>,
      %cst_30 = arith.constant -1.000000e+30 : f32
      %42 = vector.broadcast %cst_30 : f32 to vector<128x1xf32>
      %c0_31 = arith.constant 0 : index
      %c0_32 = arith.constant 0 : index
      %43 = vector.load %arg8[%c0_31, %c0_32] : memref<128x1xf32, #tpu.memory_space<vmem>>, vector<128x1xf32>
      tpu.vector_store %arg8[%c0_31, %c0_32], %42 {strides = array<i32>} : memref<128x1xf32, #tpu.memory_space<vmem>>, vector<128x1xf32>,
      %cst_33 = arith.constant 0.000000e+00 : f32
      %44 = vector.broadcast %cst_33 : f32 to vector<128x1xf32>
      %c0_34 = arith.constant 0 : index
      %c0_35 = arith.constant 0 : index
      %45 = vector.load %arg9[%c0_34, %c0_35] : memref<128x1xf32, #tpu.memory_space<vmem>>, vector<128x1xf32>
      tpu.vector_store %arg9[%c0_34, %c0_35], %44 {strides = array<i32>} : memref<128x1xf32, #tpu.memory_space<vmem>>, vector<128x1xf32>,
      %cst_36 = arith.constant 0.000000e+00 : f32
      %46 = vector.broadcast %cst_36 : f32 to vector<128x64xf32>
      %c0_37 = arith.constant 0 : index
      %c0_38 = arith.constant 0 : index
      %47 = vector.load %arg10[%c0_37, %c0_38] : memref<128x64xf32, #tpu.memory_space<vmem>>, vector<128x64xf32>
      tpu.vector_store %arg10[%c0_37, %c0_38], %46 {strides = array<i32>} : memref<128x64xf32, #tpu.memory_space<vmem>>, vector<128x64xf32>,
    } else {
    }
    %c0 = arith.constant 0 : index
    %c0_1 = arith.constant 0 : index
    %c0_2 = arith.constant 0 : index
    %3 = vector.load %arg4[%c0, %c0_1, %c0_2] : memref<1x128x64xbf16, #tpu.memory_space<vmem>>, vector<1x128x64xbf16>
    %4 = vector.shape_cast %3 : vector<1x128x64xbf16> to vector<128x64xbf16>
    %c0_3 = arith.constant 0 : index
    %c0_4 = arith.constant 0 : index
    %c0_5 = arith.constant 0 : index
    %5 = vector.load %arg5[%c0_3, %c0_4, %c0_5] : memref<1x128x64xbf16, #tpu.memory_space<vmem>>, vector<1x128x64xbf16>
    %6 = vector.shape_cast %5 : vector<1x128x64xbf16> to vector<128x64xbf16>
    %c0_6 = arith.constant 0 : index
    %c0_7 = arith.constant 0 : index
    %7 = vector.load %arg7[%c0_6, %c0_7] : memref<128x64xbf16, #tpu.memory_space<vmem>>, vector<128x64xbf16>
    %cst = arith.constant dense<0.000000e+00> : vector<128x128xf32>
    %8 = tpu.matmul %7, %4, %cst {dimension_numbers = #tpu.dot_dimension_numbers<[1], [1], [0], [0], [0, 0, 1, 0], [], []>} : vector<128x64xbf16>, vector<128x64xbf16>, vector<128x128xf32> -> vector<128x128xf32>
    %c0_8 = arith.constant 0 : index
    %c0_9 = arith.constant 0 : index
    %9 = vector.load %arg8[%c0_8, %c0_9] : memref<128x1xf32, #tpu.memory_space<vmem>>, vector<128x1xf32>
    %cst_10 = arith.constant dense<0xFF800000> : vector<128xf32>
    %10 = vector.multi_reduction <maximumf>, %8, %cst_10 [1] : vector<128x128xf32> to vector<128xf32>
    %11 = vector.shape_cast %10 : vector<128xf32> to vector<128x1xf32>
    %12 = arith.maximumf %9, %11 : vector<128x1xf32>
    %13 = arith.subf %9, %12 : vector<128x1xf32>
    %14 = math.exp %13 : vector<128x1xf32>
    %15 = vector.broadcast %12 : vector<128x1xf32> to vector<128x128xf32>
    %16 = arith.subf %8, %15 : vector<128x128xf32>
    %17 = math.exp %16 : vector<128x128xf32>
    %c0_11 = arith.constant 0 : index
    %c0_12 = arith.constant 0 : index
    %18 = vector.load %arg9[%c0_11, %c0_12] : memref<128x1xf32, #tpu.memory_space<vmem>>, vector<128x1xf32>
    %19 = arith.mulf %14, %18 : vector<128x1xf32>
    %cst_13 = arith.constant dense<0.000000e+00> : vector<128xf32>
    %20 = vector.multi_reduction <add>, %17, %cst_13 [1] : vector<128x128xf32> to vector<128xf32>
    %21 = vector.shape_cast %20 : vector<128xf32> to vector<128x1xf32>
    %22 = arith.addf %19, %21 : vector<128x1xf32>
    %c0_14 = arith.constant 0 : index
    %c0_15 = arith.constant 0 : index
    %23 = vector.load %arg9[%c0_14, %c0_15] : memref<128x1xf32, #tpu.memory_space<vmem>>, vector<128x1xf32>
    tpu.vector_store %arg9[%c0_14, %c0_15], %22 {strides = array<i32>} : memref<128x1xf32, #tpu.memory_space<vmem>>, vector<128x1xf32>,
    %c0_16 = arith.constant 0 : index
    %c0_17 = arith.constant 0 : index
    %24 = vector.load %arg10[%c0_16, %c0_17] : memref<128x64xf32, #tpu.memory_space<vmem>>, vector<128x64xf32>
    %25 = vector.broadcast %14 : vector<128x1xf32> to vector<128x64xf32>
    %26 = arith.mulf %25, %24 : vector<128x64xf32>
    %27 = arith.truncf %17 : vector<128x128xf32> to vector<128x128xbf16>
    %cst_18 = arith.constant dense<0.000000e+00> : vector<128x64xf32>
    %28 = tpu.matmul %27, %6, %cst_18 {dimension_numbers = #tpu.dot_dimension_numbers<[1], [0], [0], [1], [0, 0, 1, 1], [], []>} : vector<128x128xbf16>, vector<128x64xbf16>, vector<128x64xf32> -> vector<128x64xf32>
    %29 = arith.addf %26, %28 : vector<128x64xf32>
    %c0_19 = arith.constant 0 : index
    %c0_20 = arith.constant 0 : index
    %30 = vector.load %arg10[%c0_19, %c0_20] : memref<128x64xf32, #tpu.memory_space<vmem>>, vector<128x64xf32>
    tpu.vector_store %arg10[%c0_19, %c0_20], %29 {strides = array<i32>} : memref<128x64xf32, #tpu.memory_space<vmem>>, vector<128x64xf32>,
    %c0_21 = arith.constant 0 : index
    %c0_22 = arith.constant 0 : index
    %31 = vector.load %arg8[%c0_21, %c0_22] : memref<128x1xf32, #tpu.memory_space<vmem>>, vector<128x1xf32>
    tpu.vector_store %arg8[%c0_21, %c0_22], %12 {strides = array<i32>} : memref<128x1xf32, #tpu.memory_space<vmem>>, vector<128x1xf32>,
    %c2_i32 = arith.constant 2 : i32
    %32 = arith.cmpi eq, %arg2, %c2_i32 : i32
    %33 = arith.extui %32 : i1 to i32
    %c0_i32_23 = arith.constant 0 : i32
    %34 = arith.cmpi ne, %33, %c0_i32_23 : i32
    scf.if %34 {
      %c0_24 = arith.constant 0 : index
      %c0_25 = arith.constant 0 : index
      %35 = vector.load %arg9[%c0_24, %c0_25] : memref<128x1xf32, #tpu.memory_space<vmem>>, vector<128x1xf32>
      %36 = tpu.reciprocal %35 {approx = true} : vector<128x1xf32> -> vector<128x1xf32>
      %c0_26 = arith.constant 0 : index
      %c0_27 = arith.constant 0 : index
      %37 = vector.load %arg10[%c0_26, %c0_27] : memref<128x64xf32, #tpu.memory_space<vmem>>, vector<128x64xf32>
      %38 = vector.broadcast %36 : vector<128x1xf32> to vector<128x64xf32>
      %39 = arith.mulf %37, %38 : vector<128x64xf32>
      %c0_28 = arith.constant 0 : index
      %c0_29 = arith.constant 0 : index
      %c0_30 = arith.constant 0 : index
      %40 = vector.load %arg6[%c0_28, %c0_29, %c0_30] : memref<1x128x64xf32, #tpu.memory_space<vmem>>, vector<1x128x64xf32>
      %41 = vector.shape_cast %40 : vector<1x128x64xf32> to vector<128x64xf32>
      %42 = vector.shape_cast %39 : vector<128x64xf32> to vector<1x128x64xf32>
      tpu.vector_store %arg6[%c0_28, %c0_29, %c0_30], %42 {strides = array<i32>} : memref<1x128x64xf32, #tpu.memory_space<vmem>>, vector<1x128x64xf32>,
    } else {
    }
    return
  }
  func.func @transform_0(%arg0: i32, %arg1: i32, %arg2: i32) -> (i32, i32, i32) {
    %c0_i32 = arith.constant 0 : i32
    %c0_i32_0 = arith.constant 0 : i32
    return %arg0, %arg1, %c0_i32 : i32, i32, i32
  }
  func.func @transform_1(%arg0: i32, %arg1: i32, %arg2: i32) -> (i32, i32, i32) {
    %c0_i32 = arith.constant 0 : i32
    %c0_i32_0 = arith.constant 0 : i32
    return %arg0, %arg2, %c0_i32 : i32, i32, i32
  }
  func.func @transform_2(%arg0: i32, %arg1: i32, %arg2: i32) -> (i32, i32, i32) {
    %c0_i32 = arith.constant 0 : i32
    %c0_i32_0 = arith.constant 0 : i32
    return %arg0, %arg2, %c0_i32 : i32, i32, i32
  }
  func.func @transform_3(%arg0: i32, %arg1: i32, %arg2: i32) -> (i32, i32, i32) {
    %c0_i32 = arith.constant 0 : i32
    %c0_i32_0 = arith.constant 0 : i32
    return %arg0, %arg1, %c0_i32 : i32, i32, i32
  }
}

</mosaic_0001>

<bundles_post_ra>
// kernel: tpu_custom_call.1
= control target key start
LH: loop header
LB: loop body
LE: loop exit
PB: predicated region body
PF: predicated region fallthrough
CT: control target
= control target key end

     0   :  { %s2184_s12 = smov 0   ;;  %s2186_s13 = smov 0   ;;  %s2797_s0 = inlined_call_operand.vmem [shape: bf16[4,256,64], index: 0, kind: input, shape index: {}]   ;;  %s2798_s1 = inlined_call_operand.vmem [shape: bf16[4,384,64], index: 1, kind: input, shape index: {}]   ;;  %s2799_s2 = inlined_call_operand.vmem [shape: bf16[4,384,64], index: 2, kind: input, shape index: {}]   ;;  %s2800_s3 = inlined_call_operand.vmem [shape: f32[4,256,64], index: 3, kind: output, shape index: {}]  }
   0x1   :  { %s2188_s14 = smov 0   ;;  %s2190_s15 = smov 0  }
   0x2   :  { %s2192_s16 = smov 0   ;;  %s2194_s17 = smov 0  }
   0x3   :  { %s2196_s18 = smov 0  }
   0x4 LB: > { %s25_s19 = sadd.s32 1, %s2146_s15  ;;  %s28_s20 = sadd.s32 1, %s2150_s16  ;;  %s2158_s18 = sphi %s2196_s18, %s13_s18   ;;  %s2154_s17 = sphi %s2194_s17, %s2806_s17   ;;  %s2150_s16 = sphi %s2192_s16, %s2805_s16   ;;  %s2146_s15 = sphi %s2190_s15, %s2804_s15   ;;  %s2142_s14 = sphi %s2188_s14, %s2803_s14   ;;  %s2138_s13 = sphi %s2186_s13, %s2802_s13   ;;  %s2134_s12 = sphi %s2184_s12, %s2801_s12  }
   0x5   : > { %p26_p0 = scmp.ge.s32.totalorder %s25_s19, 3  ;;  %p1697_p1 = scmp.ge.s32.totalorder %s2158_s18, 1 }
   0x6   : > { %p199_p2 = scmp.lt.s32.totalorder %s2158_s18, 25  ;;  %s32_s21 = sadd.s32 1, %s2154_s17 }
   0x7   : > { %s2808_s19 = smov (%p26_p0, %s25_s19), 0  ;;  %s2810_s20 = smov (!%p26_p0, %s28_s20), %s2150_s16 }
   0x8   : > { %p200_p3 = pnand %p1697_p1, %p199_p2  ;;  %p30_p4 = scmp.ge.s32.totalorder %s2810_s20, 2 }
   0x9   : > { %s1698_s22 = sshll.u32 (!%p200_p3), %s2138_s13, 4  ;;  %p250_p6 = scmp.lt.s32.totalorder (!%p200_p3), %s2142_s14, 3 }
   0xa   : > { %s2812_s20 = smov (%p30_p4, %s2810_s20), 0  ;;  %s2814_s21 = smov (!%p30_p4, %s32_s21), %s2154_s17 }
   0xb   : > { %p34_p5 = scmp.ge.s32.totalorder %s2814_s21, 4  ;;  %203 = sbr.rel (%p200_p3) target bundleno = 1016 (0x3f8), region = 32 }
   0xc   : > { %p252_p7 = scmp.lt.s32.totalorder (!%p200_p3), %s1698_s22, 31  ;;  %s1701_s23 = sshll.u32 (!%p200_p3), %s2134_s12, 4 }
   0xd   : > { %s2816_s21 = smov (%p34_p5, %s2814_s21), 0  ;;  %p262_p8 = scmp.lt.s32.totalorder (!%p200_p3), %s1701_s23, 47 }
   0xe   : > { %p1708_p9 = scmp.ne.s32.totalorder (!%p200_p3), %s2134_s12, 0 }
  0x10   : > { %s2818_s14 = smov (!%p250_p6, %s2142_s14), 3  ;;  %s2820_s22 = smov (!%p252_p7, %s1698_s22), 31 }
  0x11   : > { %s1699_s24 = sshll.u32 %s2818_s14, 5  ;;  %s1919_s26 = smul.u32 48, %s2818_s14 }
  0x12   : > { %s255_s25 = sadd.s32 %s1699_s24, %s2820_s22  ;;  %s2822_s23 = smov (!%p262_p8, %s1701_s23), 47 }
  0x13   : > { %s1700_s27 = sshll.u32 %s255_s25, 2  ;;  %s1707_s28 = sshll.u32 %s255_s25, 3 }
  0x14   : > { %s2232_s4 = scalar_lea.vmem %s2797_s0, %s1700_s27  ;;  %s2237_s7 = scalar_lea.vmem %s2800_s3, %s1707_s28 }
  0x15   : > { %s265_s8 = sadd.s32 %s1919_s26, %s2822_s23  ;;  %293 = sbr.rel (%p1708_p9) target bundleno = 59 (0x3b), region = 36 }
  0x16   : > { %s1702_s9 = sshll.u32 %s265_s8, 2 }
  0x17   : > { %s2242_s13 = scalar_lea.vmem %s2798_s1, %s1702_s9  ;;  %s2247_s24 = scalar_lea.vmem %s2799_s2, %s1702_s9 }
  0x1a   : > { %v1777_v0 = vld [vmem:[%s2232_s4] sm:$0xff]   ;;  %vm406_vm0 = vcmask 519168   ;;  %v1808_v1 = vld [vmem:[%s2232_s4 + $0x8] sm:$0xff]   ;;  %v1809_v2 = vld [vmem:[%s2232_s4 + $0x10] sm:$0xff]   ;;  %vm423_vm1 = vcmask 7168   ;;  %v2160_v8 = vmov 0.0  }
  0x1b   : > { %v1778_v3 = vunpack.c.l.bf16 %v1777_v0  ;;  %v1779_v4 = vunpack.c.h.bf16 %v1777_v0  ;;  %v1782_v5 = vunpack.c.l.bf16 %v1808_v1  ;;  %v1783_v6 = vunpack.c.h.bf16 %v1808_v1  ;;  %v1810_v7 = vld [vmem:[%s2232_s4 + $0x18] sm:$0xff]   ;;  %440 = vst.msk [vmem:[#allocation4] sm:$0xff] %vm423_vm1, %v2160_v8  ;;  %441 = vst.msk [vmem:[#allocation4 + $0x8] sm:$0xff] %vm423_vm1, %v2160_v8  ;;  %v1811_v21 = vld [vmem:[%s2232_s4 + $0x20] sm:$0xff]  }
  0x1c   : > { %442 = vst.msk [vmem:[#allocation4 + $0x10] sm:$0xff] %vm423_vm1, %v2160_v8  ;;  %443 = vst.msk [vmem:[#allocation4 + $0x18] sm:$0xff] %vm423_vm1, %v2160_v8  ;;  %v1786_v9 = vunpack.c.l.bf16 %v1809_v2  ;;  %v1787_v10 = vunpack.c.h.bf16 %v1809_v2  ;;  %v1790_v11 = vunpack.c.l.bf16 %v1810_v7  ;;  %v1791_v12 = vunpack.c.h.bf16 %v1810_v7  ;;  %v1812_v22 = vld [vmem:[%s2232_s4 + $0x28] sm:$0xff]   ;;  %v1813_v27 = vld [vmem:[%s2232_s4 + $0x30] sm:$0xff]  }
  0x1d   : > { %444 = vst.msk [vmem:[#allocation4 + $0x20] sm:$0xff] %vm423_vm1, %v2160_v8  ;;  %445 = vst.msk [vmem:[#allocation4 + $0x28] sm:$0xff] %vm423_vm1, %v2160_v8  ;;  %v326_v13 = vmul.f32 0.125, %v1778_v3  ;;  %v327_v14 = vmul.f32 0.125, %v1779_v4  ;;  %v328_v15 = vmul.f32 0.125, %v1782_v5  ;;  %v329_v16 = vmul.f32 0.125, %v1783_v6 }
  0x1e   : > { %446 = vst.msk [vmem:[#allocation4 + $0x30] sm:$0xff] %vm423_vm1, %v2160_v8  ;;  %447 = vst.msk [vmem:[#allocation4 + $0x38] sm:$0xff] %vm423_vm1, %v2160_v8  ;;  %v330_v17 = vmul.f32 0.125, %v1786_v9  ;;  %v331_v18 = vmul.f32 0.125, %v1787_v10  ;;  %v332_v19 = vmul.f32 0.125, %v1790_v11  ;;  %v333_v20 = vmul.f32 0.125, %v1791_v12 }
  0x1f   : > { %448 = vst.msk [vmem:[#allocation4 + $0x40] sm:$0xff] %vm423_vm1, %v2160_v8  ;;  %449 = vst.msk [vmem:[#allocation4 + $0x48] sm:$0xff] %vm423_vm1, %v2160_v8  ;;  %v1760_v23 = vpack.c.bf16 %v326_v13, %v326_v13  ;;  %v1761_v24 = vpack.c.bf16 %v327_v14, %v327_v14  ;;  %v1762_v25 = vpack.c.bf16 %v328_v15, %v328_v15  ;;  %v1814_v28 = vld [vmem:[%s2232_s4 + $0x38] sm:$0xff]   ;;  %v1794_v33 = vunpack.c.l.bf16 %v1811_v21 }
  0x20   : > { %450 = vst.msk [vmem:[#allocation4 + $0x50] sm:$0xff] %vm423_vm1, %v2160_v8  ;;  %451 = vst.msk [vmem:[#allocation4 + $0x58] sm:$0xff] %vm423_vm1, %v2160_v8  ;;  %v1763_v26 = vpack.c.bf16 %v329_v16, %v329_v16  ;;  %v1764_v29 = vpack.c.bf16 %v330_v17, %v330_v17  ;;  %v1765_v30 = vpack.c.bf16 %v331_v18, %v331_v18  ;;  %v1795_v34 = vunpack.c.h.bf16 %v1811_v21 }
  0x21   : > { %452 = vst.msk [vmem:[#allocation4 + $0x60] sm:$0xff] %vm423_vm1, %v2160_v8  ;;  %453 = vst.msk [vmem:[#allocation4 + $0x68] sm:$0xff] %vm423_vm1, %v2160_v8  ;;  %v1766_v31 = vpack.c.bf16 %v332_v19, %v332_v19  ;;  %v1767_v32 = vpack.c.bf16 %v333_v20, %v333_v20  ;;  %v1798_v35 = vunpack.c.l.bf16 %v1812_v22  ;;  %v1799_v36 = vunpack.c.h.bf16 %v1812_v22 }
  0x22   : > { %454 = vst.msk [vmem:[#allocation4 + $0x70] sm:$0xff] %vm423_vm1, %v2160_v8  ;;  %455 = vst.msk [vmem:[#allocation4 + $0x78] sm:$0xff] %vm423_vm1, %v2160_v8  ;;  %v1802_v37 = vunpack.c.l.bf16 %v1813_v27  ;;  %v1803_v38 = vunpack.c.h.bf16 %v1813_v27  ;;  %v1806_v39 = vunpack.c.l.bf16 %v1814_v28  ;;  %v1807_v40 = vunpack.c.h.bf16 %v1814_v28 }
  0x23   : > { %407 = vst.msk [vmem:[#allocation2] sm:$0xf] %vm406_vm0, %v1760_v23  ;;  %408 = vst.msk [vmem:[#allocation2 + $0x4] sm:$0xf] %vm406_vm0, %v1761_v24  ;;  %v334_v41 = vmul.f32 0.125, %v1794_v33  ;;  %v335_v42 = vmul.f32 0.125, %v1795_v34 }
  0x24   : > { %409 = vst.msk [vmem:[#allocation2 + $0x8] sm:$0xf] %vm406_vm0, %v1762_v25  ;;  %410 = vst.msk [vmem:[#allocation2 + $0xc] sm:$0xf] %vm406_vm0, %v1763_v26  ;;  %v336_v43 = vmul.f32 0.125, %v1798_v35  ;;  %v337_v44 = vmul.f32 0.125, %v1799_v36 }
  0x25   : > { %411 = vst.msk [vmem:[#allocation2 + $0x10] sm:$0xf] %vm406_vm0, %v1764_v29  ;;  %412 = vst.msk [vmem:[#allocation2 + $0x14] sm:$0xf] %vm406_vm0, %v1765_v30  ;;  %v338_v45 = vmul.f32 0.125, %v1802_v37  ;;  %v339_v46 = vmul.f32 0.125, %v1803_v38  ;;  %v1768_v49 = vpack.c.bf16 %v334_v41, %v334_v41  ;;  %v1769_v50 = vpack.c.bf16 %v335_v42, %v335_v42 }
  0x26   : > { %413 = vst.msk [vmem:[#allocation2 + $0x18] sm:$0xf] %vm406_vm0, %v1766_v31  ;;  %414 = vst.msk [vmem:[#allocation2 + $0x1c] sm:$0xf] %vm406_vm0, %v1767_v32  ;;  %v340_v47 = vmul.f32 0.125, %v1806_v39  ;;  %v341_v48 = vmul.f32 0.125, %v1807_v40  ;;  %v1770_v51 = vpack.c.bf16 %v336_v43, %v336_v43  ;;  %v1771_v52 = vpack.c.bf16 %v337_v44, %v337_v44 }
  0x27   : > { %v1772_v53 = vpack.c.bf16 %v338_v45, %v338_v45  ;;  %v1773_v54 = vpack.c.bf16 %v339_v46, %v339_v46  ;;  %415 = vst.msk [vmem:[#allocation2 + $0x20] sm:$0xf] %vm406_vm0, %v1768_v49  ;;  %416 = vst.msk [vmem:[#allocation2 + $0x24] sm:$0xf] %vm406_vm0, %v1769_v50  ;;  %vm456_vm2 = vcmask 523264  }
  0x28   : > { %v1774_v55 = vpack.c.bf16 %v340_v47, %v340_v47  ;;  %v1775_v56 = vpack.c.bf16 %v341_v48, %v341_v48  ;;  %417 = vst.msk [vmem:[#allocation2 + $0x28] sm:$0xf] %vm406_vm0, %v1770_v51  ;;  %418 = vst.msk [vmem:[#allocation2 + $0x2c] sm:$0xf] %vm406_vm0, %v1771_v52  ;;  %v2161_v57 = vmov -1e+30  }
  0x29   : > { %419 = vst.msk [vmem:[#allocation2 + $0x30] sm:$0xf] %vm406_vm0, %v1772_v53  ;;  %420 = vst.msk [vmem:[#allocation2 + $0x34] sm:$0xf] %vm406_vm0, %v1773_v54 }
  0x2a   : > { %421 = vst.msk [vmem:[#allocation2 + $0x38] sm:$0xf] %vm406_vm0, %v1774_v55  ;;  %422 = vst.msk [vmem:[#allocation2 + $0x3c] sm:$0xf] %vm406_vm0, %v1775_v56 }
  0x2b   : > { %424 = vst.msk [vmem:[#allocation3] sm:$0xff] %vm423_vm1, %v2161_v57  ;;  %425 = vst.msk [vmem:[#allocation3 + $0x8] sm:$0xff] %vm423_vm1, %v2161_v57 }
  0x2c   : > { %426 = vst.msk [vmem:[#allocation3 + $0x10] sm:$0xff] %vm423_vm1, %v2161_v57  ;;  %427 = vst.msk [vmem:[#allocation3 + $0x18] sm:$0xff] %vm423_vm1, %v2161_v57 }
  0x2d   : > { %428 = vst.msk [vmem:[#allocation3 + $0x20] sm:$0xff] %vm423_vm1, %v2161_v57  ;;  %429 = vst.msk [vmem:[#allocation3 + $0x28] sm:$0xff] %vm423_vm1, %v2161_v57 }
  0x2e   : > { %430 = vst.msk [vmem:[#allocation3 + $0x30] sm:$0xff] %vm423_vm1, %v2161_v57  ;;  %431 = vst.msk [vmem:[#allocation3 + $0x38] sm:$0xff] %vm423_vm1, %v2161_v57 }
  0x2f   : > { %432 = vst.msk [vmem:[#allocation3 + $0x40] sm:$0xff] %vm423_vm1, %v2161_v57  ;;  %433 = vst.msk [vmem:[#allocation3 + $0x48] sm:$0xff] %vm423_vm1, %v2161_v57 }
  0x30   : > { %434 = vst.msk [vmem:[#allocation3 + $0x50] sm:$0xff] %vm423_vm1, %v2161_v57  ;;  %435 = vst.msk [vmem:[#allocation3 + $0x58] sm:$0xff] %vm423_vm1, %v2161_v57 }
  0x31   : > { %436 = vst.msk [vmem:[#allocation3 + $0x60] sm:$0xff] %vm423_vm1, %v2161_v57  ;;  %437 = vst.msk [vmem:[#allocation3 + $0x68] sm:$0xff] %vm423_vm1, %v2161_v57 }
  0x32   : > { %438 = vst.msk [vmem:[#allocation3 + $0x70] sm:$0xff] %vm423_vm1, %v2161_v57  ;;  %439 = vst.msk [vmem:[#allocation3 + $0x78] sm:$0xff] %vm423_vm1, %v2161_v57 }
  0x33   : > { %457 = vst.msk [vmem:[#allocation5] sm:$0xff] %vm456_vm2, %v2160_v8  ;;  %458 = vst.msk [vmem:[#allocation5 + $0x8] sm:$0xff] %vm456_vm2, %v2160_v8 }
  0x34   : > { %459 = vst.msk [vmem:[#allocation5 + $0x10] sm:$0xff] %vm456_vm2, %v2160_v8  ;;  %460 = vst.msk [vmem:[#allocation5 + $0x18] sm:$0xff] %vm456_vm2, %v2160_v8 }
  0x35   : > { %461 = vst.msk [vmem:[#allocation5 + $0x20] sm:$0xff] %vm456_vm2, %v2160_v8  ;;  %462 = vst.msk [vmem:[#allocation5 + $0x28] sm:$0xff] %vm456_vm2, %v2160_v8 }
  0x36   : > { %463 = vst.msk [vmem:[#allocation5 + $0x30] sm:$0xff] %vm456_vm2, %v2160_v8  ;;  %464 = vst.msk [vmem:[#allocation5 + $0x38] sm:$0xff] %vm456_vm2, %v2160_v8 }
  0x37   : > { %465 = vst.msk [vmem:[#allocation5 + $0x40] sm:$0xff] %vm456_vm2, %v2160_v8  ;;  %466 = vst.msk [vmem:[#allocation5 + $0x48] sm:$0xff] %vm456_vm2, %v2160_v8 }
  0x38   : > { %467 = vst.msk [vmem:[#allocation5 + $0x50] sm:$0xff] %vm456_vm2, %v2160_v8  ;;  %468 = vst.msk [vmem:[#allocation5 + $0x58] sm:$0xff] %vm456_vm2, %v2160_v8 }
  0x39   : > { %469 = vst.msk [vmem:[#allocation5 + $0x60] sm:$0xff] %vm456_vm2, %v2160_v8  ;;  %470 = vst.msk [vmem:[#allocation5 + $0x68] sm:$0xff] %vm456_vm2, %v2160_v8 }
  0x3a   : > { %471 = vst.msk [vmem:[#allocation5 + $0x70] sm:$0xff] %vm456_vm2, %v2160_v8  ;;  %472 = vst.msk [vmem:[#allocation5 + $0x78] sm:$0xff] %vm456_vm2, %v2160_v8 }
  0x3b PF: > { %v1982_v58 = vld [vmem:[%s2242_s13 + $0x38] sm:$0xff]   ;;  %vm601_vm3 = vcmask 523264   ;;  %v1983_v59 = vld [vmem:[%s2242_s13 + $0x30] sm:$0xff]   ;;  %v1984_v61 = vld [vmem:[%s2242_s13 + $0x28] sm:$0xff]   ;;  %v2162_v25 = vmov 0   ;;  %vm1067_vm4 = vcmask 7168  }
  0x3c   : > { %1911 = vmatprep.subr.msk.bf16.mxu0 %vm601_vm3, %v1982_v58  ;;  %v648_v60 = vsel %vm601_vm3, %v1982_v58, 0  ;;  %v645_v62 = vsel %vm601_vm3, %v1983_v59, 0  ;;  %v1990_v63 = vld [vmem:[#allocation2] sm:$0xff]   ;;  %v642_v0 = vsel %vm601_vm3, %v1984_v61, 0  ;;  %v1986_v3 = vld [vmem:[%s2242_s13 + $0x18] sm:$0xff]   ;;  %v1987_v5 = vld [vmem:[%s2242_s13 + $0x10] sm:$0xff]   ;;  %1981 = vset.pattern.permute.xlu1 %v2162_v25 }
  0x3d   : > { %1848 = vmatpush3.bf16.xpose.msra.mxu0 %v648_v60  ;;  %1863 = vmatprep.mubr.msk.bf16.mxu0 %vm601_vm3, %v1990_v63  ;;  %v1985_v1 = vld [vmem:[%s2242_s13 + $0x20] sm:$0xff]   ;;  %v636_v4 = vsel %vm601_vm3, %v1986_v3, 0  ;;  %v633_v6 = vsel %vm601_vm3, %v1987_v5, 0  ;;  %v1988_v7 = vld [vmem:[%s2242_s13 + $0x8] sm:$0xff]   ;;  %v1992_v12 = vld [vmem:[#allocation2 + $0x10] sm:$0xff]   ;;  %p1757_p10 = scmp.ne.s32.totalorder %s2134_s12, 2 }
  0x3e   : > { %1912 = vmatprep.subr.msk.bf16.mxu0 %vm601_vm3, %v1983_v59  ;;  %v639_v2 = vsel %vm601_vm3, %v1985_v1, 0  ;;  %v630_v8 = vsel %vm601_vm3, %v1988_v7, 0  ;;  %v1989_v9 = vld [vmem:[%s2242_s13] sm:$0xff]   ;;  %v1991_v11 = vld [vmem:[#allocation2 + $0x8] sm:$0xff]   ;;  %v1993_v13 = vld [vmem:[#allocation2 + $0x18] sm:$0xff]   ;;  %1980 = vset.pattern.permute.xlu0 %v2162_v25 }
  0x3f   : > { %v627_v10 = vsel %vm601_vm3, %v1989_v9, 0  ;;  %v1994_v14 = vld [vmem:[#allocation2 + $0x20] sm:$0xff]   ;;  %v1995_v15 = vld [vmem:[#allocation2 + $0x28] sm:$0xff]   ;;  %v1996_v16 = vld [vmem:[#allocation2 + $0x30] sm:$0xff]  }
  0x40   : > { %v1997_v17 = vld [vmem:[#allocation2 + $0x38] sm:$0xff]   ;;  %v2435_v36 = vld [vmem:[#allocation3 + $0x10] sm:$0xff]  ;;  %v2438_v39 = vld [vmem:[#allocation3] sm:$0xff] }
  0x41   : > { %v1998_v35 = vld [vmem:[%s2247_s24 + $0x38] sm:$0xff]   ;;  %v1999_v37 = vld [vmem:[%s2247_s24 + $0x30] sm:$0xff]   ;;  %v2000_v43 = vld [vmem:[%s2247_s24 + $0x28] sm:$0xff]  }
  0x42   : > { %1879 = vmatprep.subr.bf16.mxu1 %v1998_v35  ;;  %v2443_v42 = vld [vmem:[#allocation3 + $0x18] sm:$0xff]  ;;  %v2452_v46 = vld [vmem:[#allocation3 + $0x8] sm:$0xff]  ;;  %v2001_v49 = vld [vmem:[%s2247_s24 + $0x20] sm:$0xff]  }
  0x43   : > { %1880 = vmatpush3.bf16.msra.mxu1 %v1998_v35  ;;  %v2467_v51 = vld [vmem:[#allocation3 + $0x20] sm:$0xff]  ;;  %v2471_v53 = vld [vmem:[#allocation3 + $0x38] sm:$0xff]  ;;  %v2478_v57 = vld [vmem:[#allocation3 + $0x30] sm:$0xff] }
  0x44   : > { %1881 = vmatprep.subr.bf16.mxu1 %v1999_v37  ;;  %v2002_v54 = vld [vmem:[%s2247_s24 + $0x18] sm:$0xff]   ;;  %v2485_v60 = vld [vmem:[#allocation3 + $0x28] sm:$0xff] }
  0x45   : > { %1850 = vmatpush3.bf16.xpose.msra.mxu0 %v645_v62 }
  0x46   : > { %1913 = vmatprep.subr.msk.bf16.mxu0 %vm601_vm3, %v1984_v61  ;;  %v2003_v61 = vld [vmem:[%s2247_s24 + $0x10] sm:$0xff]  }
  0x47   : > { %1882 = vmatpush3.bf16.msra.mxu1 %v1999_v37  ;;  %v2532_v37 = vld [vmem:[#allocation3 + $0x78] sm:$0xff] }
  0x48   : > { %1883 = vmatprep.subr.bf16.mxu1 %v2000_v43 }
  0x4b   : > { %1884 = vmatpush3.bf16.msra.mxu1 %v2000_v43  ;;  %v2540_v43 = vld [vmem:[#allocation3 + $0x70] sm:$0xff] }
  0x4c   : > { %1885 = vmatprep.subr.bf16.mxu1 %v2001_v49 }
  0x4d   : > { %1852 = vmatpush3.bf16.xpose.msra.mxu0 %v642_v0  ;;  %v2493_v0 = vld [vmem:[#allocation3 + $0x40] sm:$0xff] }
  0x4e   : > { %1914 = vmatprep.subr.msk.bf16.mxu0 %vm601_vm3, %v1985_v1 }
  0x4f   : > { %1886 = vmatpush3.bf16.msra.mxu1 %v2001_v49 }
  0x50   : > { %1887 = vmatprep.subr.bf16.mxu1 %v2002_v54 }
  0x53   : > { %1888 = vmatpush3.bf16.msra.mxu1 %v2002_v54 }
  0x54   : > { %1889 = vmatprep.subr.bf16.mxu1 %v2003_v61 }
  0x55   : > { %1854 = vmatpush3.bf16.xpose.msra.mxu0 %v639_v2 }
  0x56   : > { %1915 = vmatprep.subr.msk.bf16.mxu0 %vm601_vm3, %v1986_v3  ;;  %v2501_v3 = vld [vmem:[#allocation3 + $0x58] sm:$0xff] }
  0x57   : > { %1890 = vmatpush3.bf16.msra.mxu1 %v2003_v61 }
  0x5d   : > { %1856 = vmatpush3.bf16.xpose.msra.mxu0 %v636_v4  ;;  %v2004_v4 = vld [vmem:[%s2247_s24 + $0x8] sm:$0xff]  }
  0x5e   : > { %1916 = vmatprep.subr.msk.bf16.mxu0 %vm601_vm3, %v1987_v5  ;;  %1891 = vmatprep.subr.bf16.mxu1 %v2004_v4 }
  0x5f   : > { %1892 = vmatpush3.bf16.msra.mxu1 %v2004_v4 }
  0x65   : > { %1858 = vmatpush3.bf16.xpose.msra.mxu0 %v633_v6 }
  0x66   : > { %1917 = vmatprep.subr.msk.bf16.mxu0 %vm601_vm3, %v1988_v7  ;;  %v2509_v7 = vld [vmem:[#allocation3 + $0x50] sm:$0xff] }
  0x6d   : > { %1860 = vmatpush3.bf16.xpose.msra.mxu0 %v630_v8 }
  0x6e   : > { %1918 = vmatprep.subr.msk.bf16.mxu0 %vm601_vm3, %v1989_v9 }
  0x75   : > { %1862 = vmatpush3.bf16.xpose.msra.mxu0 %v627_v10 }
  0x7c   : > { %1864 = vmatmul.mubr.msk.bf16.vlgmr.msra.gmra.mxu0 %vm601_vm3, %v1991_v11  ;;  %v2517_v11 = vld [vmem:[#allocation3 + $0x48] sm:$0xff] }
  0x7d   : > { %1867 = vmatprep.mubr.msk.bf16.mxu0 %vm601_vm3, %v1992_v12  ;;  %v2005_v12 = vld [vmem:[%s2247_s24] sm:$0xff]  }
  0x7e   : > { %1893 = vmatprep.subr.bf16.mxu1 %v2005_v12 }
  0x7f   : > { %1894 = vmatpush3.bf16.msra.mxu1 %v2005_v12 }
  0x84   : > { %1868 = vmatmul.mubr.msk.bf16.gmra.mxu0 %vm601_vm3, %v1993_v13 }
  0x85   : > { %1871 = vmatprep.mubr.msk.bf16.mxu0 %vm601_vm3, %v1994_v14 }
  0x8c   : > { %1872 = vmatmul.mubr.msk.bf16.gmra.mxu0 %vm601_vm3, %v1995_v15 }
  0x8d   : > { %1875 = vmatprep.mubr.msk.bf16.mxu0 %vm601_vm3, %v1996_v16  ;;  %v2526_v16 = vld [vmem:[#allocation3 + $0x60] sm:$0xff] }
  0x94   : > { %1876 = vmatmul.mubr.msk.bf16.gmra.mxu0 %vm601_vm3, %v1997_v17 }
 0x13c   : > { %v2386_v18 = vpop.f32.mrf.mxu0 }
 0x13d   : > { %767 = vmax.xlane.f32.xlu1 %v2386_v18 }
 0x13e   : > { %v2389_v19 = vpop.f32.mrf.mxu0 }
 0x13f   : > { %763 = vmax.xlane.f32.xlu0 %v2389_v19 }
 0x140   : > { %v2392_v20 = vpop.f32.mrf.mxu0 }
 0x141   : > { %769 = vmax.xlane.f32.xlu1 %v2392_v20 }
 0x142   : > { %v2395_v21 = vpop.f32.mrf.mxu0 }
 0x143   : > { %765 = vmax.xlane.f32.xlu0 %v2395_v21 }
 0x144   : > { %v2398_v22 = vpop.f32.mrf.mxu0 }
 0x146   : > { %v2400_v23 = vpop.f32.mrf.mxu0 }
 0x147   : > { %771 = vmax.xlane.f32.xlu0 %v2400_v23 }
 0x148   : > { %v2403_v24 = vpop.f32.mrf.mxu0 }
 0x149   : > { %777 = vmax.xlane.f32.xlu1 %v2403_v24 }
 0x14a   : > { %v2406_v26 = vpop.f32.mrf.mxu0 }
 0x14b   : > { %775 = vmax.xlane.f32.xlu0 %v2398_v22 }
 0x14c   : > { %v2409_v27 = vpop.f32.mrf.mxu0 }
 0x14d   : > { %773 = vmax.xlane.f32.xlu1 %v2406_v26 }
 0x14e   : > { %v2412_v28 = vpop.f32.mrf.mxu0 }
 0x14f   : > { %779 = vmax.xlane.f32.xlu0 %v2412_v28 }
 0x150   : > { %v2415_v29 = vpop.f32.mrf.mxu0 }
 0x151   : > { %785 = vmax.xlane.f32.xlu1 %v2415_v29 }
 0x152   : > { %v2418_v30 = vpop.f32.mrf.mxu0 }
 0x153   : > { %783 = vmax.xlane.f32.xlu0 %v2409_v27 }
 0x154   : > { %v2421_v31 = vpop.f32.mrf.mxu0 }
 0x155   : > { %781 = vmax.xlane.f32.xlu1 %v2418_v30 }
 0x156   : > { %v2424_v32 = vpop.f32.mrf.mxu0 }
 0x157   : > { %787 = vmax.xlane.f32.xlu0 %v2424_v32 }
 0x158   : > { %v2427_v33 = vpop.f32.mrf.mxu0 }
 0x159   : > { %793 = vmax.xlane.f32.xlu1 %v2427_v33 }
 0x15a   : > { %v2431_v34 = vpop.f32.mrf.mxu0 }
 0x15b   : > { %791 = vmax.xlane.f32.xlu0 %v2421_v31 }
 0x15d   : > { %789 = vmax.xlane.f32.xlu1 %v2431_v34 }
 0x1c6   : > { %v768_v38 = vpop.xlane.xlu1 %767 }
 0x1c7   : > { %v2441_v40 = vmax.f32 %v2435_v36, %v768_v38 }
 0x1c8   : > { %v764_v41 = vpop.xlane.xlu0 %763 }
 0x1c9   : > { %1383 = vst.msk [vmem:[#allocation3 + $0x10] sm:$0xff] %vm1067_vm4, %v2441_v40  ;;  %v2449_v44 = vmax.f32 %v2438_v39, %v764_v41  ;;  %871 = vperm.xlu1 %1981, %v2441_v40  }
 0x1ca   : > { %v770_v45 = vpop.xlane.xlu1 %769 }
 0x1cb   : > { %1381 = vst.msk [vmem:[#allocation3] sm:$0xff] %vm1067_vm4, %v2449_v44  ;;  %v2457_v47 = vmax.f32 %v2443_v42, %v770_v45  ;;  %861 = vperm.xlu0 %1980, %v2449_v44   ;;  %v811_v8 = vsub.f32 %v2438_v39, %v2449_v44 }
 0x1cc   : > { %v766_v48 = vpop.xlane.xlu0 %765 }
 0x1cd   : > { %1384 = vst.msk [vmem:[#allocation3 + $0x18] sm:$0xff] %vm1067_vm4, %v2457_v47  ;;  %v2464_v50 = vmax.f32 %v2452_v46, %v766_v48  ;;  %876 = vperm.xlu1 %1981, %v2457_v47   ;;  %v814_v14 = vsub.f32 %v2443_v42, %v2457_v47  ;;  %v827_v17 = vmul.f32 1.442695, %v811_v8  ;;  %v760_v47 = vld [vmem:[#allocation3 + $0x68] sm:$0xff]  ;;  %v813_v48 = vsub.f32 %v2435_v36, %v2441_v40 }
 0x1cf   : > { %1382 = vst.msk [vmem:[#allocation3 + $0x8] sm:$0xff] %vm1067_vm4, %v2464_v50  ;;  %v812_v38 = vsub.f32 %v2452_v46, %v2464_v50  ;;  %v833_v41 = vmul.f32 1.442695, %v814_v14  ;;  %2006 = vpow2.f32 %v827_v17 }
 0x1d0   : > { %v772_v52 = vpop.xlane.xlu0 %771 }
 0x1d1   : > { %v2475_v55 = vmax.f32 %v2467_v51, %v772_v52  ;;  %866 = vperm.xlu1 %1981, %v2464_v50   ;;  %v829_v49 = vmul.f32 1.442695, %v812_v38  ;;  %2008 = vpow2.f32 %v833_v41 }
 0x1d2   : > { %v778_v56 = vpop.xlane.xlu1 %777 }
 0x1d3   : > { %1385 = vst.msk [vmem:[#allocation3 + $0x20] sm:$0xff] %vm1067_vm4, %v2475_v55  ;;  %v2483_v58 = vmax.f32 %v2471_v53, %v778_v56  ;;  %2010 = vpow2.f32 %v829_v49 }
 0x1d4   : > { %v776_v59 = vpop.xlane.xlu0 %775 }
 0x1d5   : > { %1388 = vst.msk [vmem:[#allocation3 + $0x38] sm:$0xff] %vm1067_vm4, %v2483_v58  ;;  %v2491_v62 = vmax.f32 %v2478_v57, %v776_v59  ;;  %v818_v44 = vsub.f32 %v2471_v53, %v2483_v58  ;;  %v815_v59 = vsub.f32 %v2467_v51, %v2475_v55 }
 0x1d6   : > { %v774_v63 = vpop.xlane.xlu1 %773 }
 0x1d7   : > { %1387 = vst.msk [vmem:[#allocation3 + $0x30] sm:$0xff] %vm1067_vm4, %v2491_v62  ;;  %v2498_v1 = vmax.f32 %v2485_v60, %v774_v63  ;;  %891 = vperm.xlu1 %1981, %v2491_v62   ;;  %v841_v54 = vmul.f32 1.442695, %v818_v44  ;;  %v835_v63 = vmul.f32 1.442695, %v815_v59 }
 0x1d8   : > { %v780_v2 = vpop.xlane.xlu0 %779 }
 0x1d9   : > { %1386 = vst.msk [vmem:[#allocation3 + $0x28] sm:$0xff] %vm1067_vm4, %v2498_v1  ;;  %v2507_v5 = vmax.f32 %v2493_v0, %v780_v2  ;;  %v816_v56 = vsub.f32 %v2485_v60, %v2498_v1  ;;  %2012 = vpow2.f32 %v841_v54 }
 0x1da   : > { %v786_v6 = vpop.xlane.xlu1 %785 }
 0x1db   : > { %1389 = vst.msk [vmem:[#allocation3 + $0x40] sm:$0xff] %vm1067_vm4, %v2507_v5  ;;  %v806_v9 = vmax.f32 %v2501_v3, %v786_v6  ;;  %881 = vperm.xlu1 %1981, %v2475_v55   ;;  %v837_v61 = vmul.f32 1.442695, %v816_v56  ;;  %v819_v8 = vsub.f32 %v2493_v0, %v2507_v5 }
 0x1dc   : > { %v784_v10 = vpop.xlane.xlu0 %783  ;;  %v2576_v55 = vpop.eup %2006 }
 0x1dd   : > { %1392 = vst.msk [vmem:[#allocation3 + $0x58] sm:$0xff] %vm1067_vm4, %v806_v9  ;;  %v2522_v13 = vmax.f32 %v2509_v7, %v784_v10  ;;  %v822_v60 = vsub.f32 %v2501_v3, %v806_v9  ;;  %v843_v12 = vmul.f32 1.442695, %v819_v8 }
 0x1de   : > { %v782_v15 = vpop.xlane.xlu1 %781  ;;  %v2581_v6 = vpop.eup %2008 }
 0x1df   : > { %1391 = vst.msk [vmem:[#allocation3 + $0x50] sm:$0xff] %vm1067_vm4, %v2522_v13  ;;  %v804_v25 = vmax.f32 %v2517_v11, %v782_v15  ;;  %886 = vperm.xlu1 %1981, %v2498_v1   ;;  %v817_v1 = vsub.f32 %v2478_v57, %v2491_v62  ;;  %v849_v2 = vmul.f32 1.442695, %v822_v60  ;;  %v821_v3 = vsub.f32 %v2509_v7, %v2522_v13 }
 0x1e0   : > { %v788_v35 = vpop.xlane.xlu0 %787  ;;  %v2587_v10 = vpop.eup %2010 }
 0x1e1   : > { %1390 = vst.msk [vmem:[#allocation3 + $0x48] sm:$0xff] %vm1067_vm4, %v804_v25  ;;  %v2538_v39 = vmax.f32 %v2526_v16, %v788_v35  ;;  %906 = vperm.xlu0 %1980, %v804_v25   ;;  %v820_v51 = vsub.f32 %v2517_v11, %v804_v25  ;;  %v839_v4 = vmul.f32 1.442695, %v817_v1 }
 0x1e2   : > { %v794_v42 = vpop.xlane.xlu1 %793 }
 0x1e3   : > { %1393 = vst.msk [vmem:[#allocation3 + $0x60] sm:$0xff] %vm1067_vm4, %v2538_v39  ;;  %v2547_v45 = vmax.f32 %v2532_v37, %v794_v42  ;;  %896 = vperm.xlu1 %1981, %v2483_v58   ;;  %v831_v58 = vmul.f32 1.442695, %v813_v48  ;;  %v845_v57 = vmul.f32 1.442695, %v820_v51 }
 0x1e4   : > { %v792_v46 = vpop.xlane.xlu0 %791 }
 0x1e5   : > { %v826_v50 = vsub.f32 %v2532_v37, %v2547_v45  ;;  %1396 = vst.msk [vmem:[#allocation3 + $0x78] sm:$0xff] %vm1067_vm4, %v2547_v45  ;;  %v2557_v52 = vmax.f32 %v2540_v43, %v792_v46  ;;  %916 = vperm.xlu0 %1980, %v806_v9   ;;  %2014 = vpow2.f32 %v831_v58  ;;  %v847_v9 = vmul.f32 1.442695, %v821_v3 }
 0x1e6   : > { %v790_v53 = vpop.xlane.xlu1 %789  ;;  %2016 = vpow2.f32 %v837_v61  ;;  %v2590_v11 = vpop.eup %2012 }
 0x1e7   : > { %v825_v36 = vsub.f32 %v2540_v43, %v2557_v52  ;;  %1395 = vst.msk [vmem:[#allocation3 + $0x70] sm:$0xff] %vm1067_vm4, %v2557_v52  ;;  %v808_v40 = vmax.f32 %v760_v47, %v790_v53  ;;  %901 = vperm.xlu1 %1981, %v2507_v5   ;;  %2018 = vpow2.f32 %v835_v63 }
 0x1e8   : > { %2020 = vpow2.f32 %v849_v2 }
 0x1e9   : > { %1394 = vst.msk [vmem:[#allocation3 + $0x68] sm:$0xff] %vm1067_vm4, %v808_v40  ;;  %926 = vperm.xlu0 %1980, %v808_v40   ;;  %v824_v62 = vsub.f32 %v760_v47, %v808_v40  ;;  %2022 = vpow2.f32 %v839_v4 }
 0x1ea   : > { %2024 = vpow2.f32 %v845_v57 }
 0x1eb   : > { %911 = vperm.xlu1 %1981, %v2522_v13   ;;  %v853_v7 = vmul.f32 1.442695, %v824_v62  ;;  %2026 = vpow2.f32 %v847_v9  ;;  %v823_v13 = vsub.f32 %v2526_v16, %v2538_v39 }
 0x1ed   : > { %936 = vperm.xlu0 %1980, %v2547_v45   ;;  %2028 = vpow2.f32 %v853_v7  ;;  %v851_v5 = vmul.f32 1.442695, %v823_v13 }
 0x1ee   : > { %2030 = vpow2.f32 %v843_v12 }
 0x1ef   : > { %921 = vperm.xlu1 %1981, %v2538_v39   ;;  %2032 = vpow2.f32 %v851_v5 }
 0x1f1   : > { %1102 = vperm.xlu0 %1980, %v2576_v55  }
 0x1f2   : > { %v2595_v14 = vpop.eup %2014 }
 0x1f3   : > { %931 = vperm.xlu1 %1981, %v2557_v52   ;;  %v2598_v0 = vpop.eup %2016 }
 0x1f4   : > { %v2601_v15 = vpop.eup %2018 }
 0x1f5   : > { %1117 = vperm.xlu0 %1980, %v2581_v6   ;;  %v2604_v17 = vpop.eup %2020 }
 0x1f6   : > { %v2607_v16 = vpop.eup %2022 }
 0x1f7   : > { %1107 = vperm.xlu1 %1981, %v2587_v10   ;;  %v2610_v25 = vpop.eup %2024 }
 0x1f8   : > { %v2613_v35 = vpop.eup %2026 }
 0x1f9   : > { %1137 = vperm.xlu0 %1980, %v2590_v11  }
 0x1fa   : > { %v2616_v38 = vpop.eup %2028 }
 0x1fb   : > { %1112 = vperm.xlu1 %1981, %v2595_v14   ;;  %v2619_v39 = vpop.eup %2030 }
 0x1fc   : > { %v2622_v41 = vpop.eup %2032 }
 0x1fd   : > { %1127 = vperm.xlu0 %1980, %v2598_v0  }
 0x1ff   : > { %1122 = vperm.xlu1 %1981, %v2601_v15  }
 0x201   : > { %1157 = vperm.xlu0 %1980, %v2604_v17  }
 0x203   : > { %1132 = vperm.xlu1 %1981, %v2607_v16  }
 0x205   : > { %1147 = vperm.xlu0 %1980, %v2610_v25  }
 0x207   : > { %1152 = vperm.xlu1 %1981, %v2613_v35  }
 0x209   : > { %1167 = vperm.xlu0 %1980, %v2616_v38  }
 0x20b   : > { %1142 = vperm.xlu1 %1981, %v2619_v39  }
 0x20f   : > { %1162 = vperm.xlu1 %1981, %v2622_v41  }
 0x244   : > { %v872_v42 = vpop.permute.xlu1 %871 }
 0x245   : > { %v941_v44 = vsub.f32 %v2386_v18, %v872_v42 }
 0x246   : > { %v862_v46 = vpop.permute.xlu0 %861 }
 0x247   : > { %v959_v47 = vmul.f32 1.442695, %v941_v44  ;;  %v939_v48 = vsub.f32 %v2389_v19, %v862_v46 }
 0x248   : > { %v877_v49 = vpop.permute.xlu1 %876 }
 0x249   : > { %2034 = vpow2.f32 %v959_v47  ;;  %v955_v53 = vmul.f32 1.442695, %v939_v48  ;;  %v942_v54 = vsub.f32 %v2392_v20, %v877_v49 }
 0x24b   : > { %2036 = vpow2.f32 %v955_v53  ;;  %v961_v56 = vmul.f32 1.442695, %v942_v54 }
 0x24c   : > { %v867_v40 = vpop.permute.xlu1 %866 }
 0x24d   : > { %v940_v58 = vsub.f32 %v2395_v21, %v867_v40  ;;  %2038 = vpow2.f32 %v961_v56 }
 0x24f   : > { %v957_v59 = vmul.f32 1.442695, %v940_v58 }
 0x251   : > { %2040 = vpow2.f32 %v957_v59 }
 0x252   : > { %v892_v61 = vpop.permute.xlu1 %891 }
 0x253   : > { %v945_v18 = vsub.f32 %v2398_v22, %v892_v61 }
 0x255   : > { %v967_v60 = vmul.f32 1.442695, %v945_v18 }
 0x256   : > { %v2035_v63 = vpop.eup %2034  ;;  %v882_v1 = vpop.permute.xlu1 %881 }
 0x257   : > { %2042 = vpow2.f32 %v967_v60  ;;  %v943_v19 = vsub.f32 %v2400_v23, %v882_v1  ;;  %1023 = vadd.xlane.f32.xlu0 %v2035_v63 }
 0x258   : > { %v2037_v2 = vpop.eup %2036 }
 0x259   : > { %v963_v20 = vmul.f32 1.442695, %v943_v19  ;;  %1019 = vadd.xlane.f32.xlu1 %v2037_v2 }
 0x25a   : > { %v887_v51 = vpop.permute.xlu1 %886  ;;  %v2039_v4 = vpop.eup %2038 }
 0x25b   : > { %2044 = vpow2.f32 %v963_v20  ;;  %v944_v21 = vsub.f32 %v2406_v26, %v887_v51  ;;  %v1197_v12 = vpack.c.bf16 %v2039_v4, %v2035_v63 }
 0x25c   : > { %v907_v3 = vpop.permute.xlu0 %906 }
 0x25d   : > { %v965_v57 = vmul.f32 1.442695, %v944_v21  ;;  %1025 = vadd.xlane.f32.xlu1 %v2039_v4  ;;  %v948_v22 = vsub.f32 %v2418_v30, %v907_v3 }
 0x25e   : > { %v2041_v62 = vpop.eup %2040  ;;  %v897_v8 = vpop.permute.xlu1 %896 }
 0x25f   : > { %2046 = vpow2.f32 %v965_v57  ;;  %v946_v9 = vsub.f32 %v2403_v24, %v897_v8  ;;  %1021 = vadd.xlane.f32.xlu0 %v2041_v62  ;;  %v1196_v23 = vpack.c.bf16 %v2041_v62, %v2037_v2  ;;  %v973_v5 = vmul.f32 1.442695, %v948_v22 }
 0x260   : > { %v917_v7 = vpop.permute.xlu0 %916 }
 0x261   : > { %v969_v13 = vmul.f32 1.442695, %v946_v9  ;;  %1895 = vmatprep.mubr.bf16.mxu1 %v1196_v23  ;;  %v950_v26 = vsub.f32 %v2415_v29, %v917_v7  ;;  %v855_v9 = vmul.f32 1.442695, %v825_v36  ;;  %v857_v23 = vmul.f32 1.442695, %v826_v50 }
 0x262   : > { %1896 = vmatmul.mubr.bf16.vlgmr.msra.gmra.mxu1 %v1197_v12  ;;  %v902_v42 = vpop.permute.xlu1 %901 }
 0x263   : > { %2048 = vpow2.f32 %v969_v13  ;;  %v947_v44 = vsub.f32 %v2412_v28, %v902_v42  ;;  %v977_v24 = vmul.f32 1.442695, %v950_v26 }
 0x264   : > { %v2043_v46 = vpop.eup %2042  ;;  %v927_v30 = vpop.permute.xlu0 %926  ;;  %2050 = vpow2.f32 %v973_v5 }
 0x265   : > { %v971_v47 = vmul.f32 1.442695, %v947_v44  ;;  %1031 = vadd.xlane.f32.xlu0 %v2043_v46  ;;  %v952_v48 = vsub.f32 %v2431_v34, %v927_v30 }
 0x266   : > { %v912_v49 = vpop.permute.xlu1 %911 }
 0x267   : > { %2052 = vpow2.f32 %v971_v47  ;;  %v949_v53 = vsub.f32 %v2409_v27, %v912_v49  ;;  %v981_v40 = vmul.f32 1.442695, %v952_v48  ;;  %v989_v47 = vld [vmem:[#allocation4 + $0x10] sm:$0xff]  ;;  %v987_v48 = vld [vmem:[#allocation4] sm:$0xff] }
 0x268   : > { %v2045_v54 = vpop.eup %2044  ;;  %v937_v56 = vpop.permute.xlu0 %936  ;;  %2054 = vpow2.f32 %v977_v24  ;;  %v1005_v49 = vmul.f32 %v2595_v14, %v989_v47 }
 0x269   : > { %v975_v29 = vmul.f32 1.442695, %v949_v53  ;;  %1027 = vadd.xlane.f32.xlu0 %v2045_v54  ;;  %v954_v28 = vsub.f32 %v2427_v33, %v937_v56  ;;  %v1003_v56 = vmul.f32 %v2576_v55, %v987_v48 }
 0x26a   : > { %v922_v58 = vpop.permute.xlu1 %921 }
 0x26b   : > { %2056 = vpow2.f32 %v975_v29  ;;  %v951_v59 = vsub.f32 %v2424_v32, %v922_v58  ;;  %v985_v34 = vmul.f32 1.442695, %v954_v28  ;;  %v988_v58 = vld [vmem:[#allocation4 + $0x8] sm:$0xff] }
 0x26c   : > { %v2047_v61 = vpop.eup %2046  ;;  %2058 = vpow2.f32 %v981_v40  ;;  %v2653_v13 = vpop.permute.xlu0 %1102  ;;  %v990_v40 = vld [vmem:[#allocation4 + $0x18] sm:$0xff] }
 0x26d   : > { %v979_v18 = vmul.f32 1.442695, %v951_v59  ;;  %v1198_v60 = vpack.c.bf16 %v2047_v61, %v2045_v54  ;;  %v1006_v59 = vmul.f32 %v2581_v6, %v990_v40 }
 0x26e   : > { %v932_v63 = vpop.permute.xlu1 %931 }
 0x26f   : > { %2060 = vpow2.f32 %v979_v18  ;;  %v953_v27 = vsub.f32 %v2421_v31, %v932_v63  ;;  %1899 = vmatprep.mubr.bf16.mxu1 %v1198_v60  ;;  %v1004_v60 = vmul.f32 %v2587_v10, %v988_v58  ;;  %v993_v63 = vld [vmem:[#allocation4 + $0x30] sm:$0xff]  ;;  %v994_v10 = vld [vmem:[#allocation4 + $0x38] sm:$0xff] }
 0x270   : > { %v2049_v1 = vpop.eup %2048  ;;  %2062 = vpow2.f32 %v985_v34  ;;  %v2657_v52 = vpop.permute.xlu0 %1117  ;;  %v1009_v55 = vmul.f32 %v2607_v16, %v993_v63 }
 0x271   : > { %v983_v19 = vmul.f32 1.442695, %v953_v27  ;;  %1033 = vadd.xlane.f32.xlu1 %v2049_v1  ;;  %v1199_v2 = vpack.c.bf16 %v2049_v1, %v2043_v46  ;;  %v2051_v33 = vpop.eup %2050  ;;  %v991_v1 = vld [vmem:[#allocation4 + $0x20] sm:$0xff] }
 0x272   : > { %v2655_v43 = vpop.permute.xlu1 %1107  ;;  %v1007_v6 = vmul.f32 %v2601_v15, %v991_v1  ;;  %v1087_v1 = vld [vmem:[#allocation5 + $0x18] sm:$0xff] }
 0x273   : > { %2064 = vpow2.f32 %v983_v19  ;;  %1900 = vmatmul.mubr.bf16.gmra.mxu1 %v1199_v2 }
 0x274   : > { %v2053_v20 = vpop.eup %2052  ;;  %2066 = vpow2.f32 %v855_v9  ;;  %v2661_v5 = vpop.permute.xlu0 %1137  ;;  %v996_v9 = vld [vmem:[#allocation4 + $0x48] sm:$0xff] }
 0x275   : > { %1029 = vadd.xlane.f32.xlu1 %v2047_v61  ;;  %v1200_v32 = vpack.c.bf16 %v2051_v33, %v2053_v20  ;;  %v2055_v51 = vpop.eup %2054  ;;  %2068 = vpow2.f32 %v857_v23  ;;  %v1012_v48 = vmul.f32 %v2610_v25, %v996_v9 }
 0x276   : > { %v2659_v36 = vpop.permute.xlu1 %1112 }
 0x277   : > { %1903 = vmatprep.mubr.bf16.mxu1 %v1200_v32 }
 0x278   : > { %v2057_v21 = vpop.eup %2056  ;;  %v2665_v45 = vpop.permute.xlu0 %1127 }
 0x279   : > { %1041 = vadd.xlane.f32.xlu1 %v2055_v51  ;;  %1039 = vadd.xlane.f32.xlu0 %v2057_v21  ;;  %v1201_v4 = vpack.c.bf16 %v2055_v51, %v2057_v21  ;;  %v2059_v3 = vpop.eup %2058  ;;  %v992_v51 = vld [vmem:[#allocation4 + $0x28] sm:$0xff] }
 0x27a   : > { %v2663_v37 = vpop.permute.xlu1 %1122  ;;  %v1008_v16 = vmul.f32 %v2598_v0, %v992_v51 }
 0x27b   : > { %1904 = vmatmul.mubr.bf16.gmra.mxu1 %v1201_v4 }
 0x27c   : > { %v2061_v31 = vpop.eup %2060  ;;  %v2669_v26 = vpop.permute.xlu0 %1157 }
 0x27d   : > { %1037 = vadd.xlane.f32.xlu1 %v2051_v33  ;;  %1035 = vadd.xlane.f32.xlu0 %v2053_v20  ;;  %v1202_v57 = vpack.c.bf16 %v2059_v3, %v2061_v31  ;;  %v2063_v62 = vpop.eup %2062  ;;  %v1010_v20 = vmul.f32 %v2590_v11, %v994_v10  ;;  %v995_v11 = vld [vmem:[#allocation4 + $0x40] sm:$0xff] }
 0x27e   : > { %v2667_v50 = vpop.permute.xlu1 %1132  ;;  %v1011_v0 = vmul.f32 %v2619_v39, %v995_v11  ;;  %v1000_v39 = vld [vmem:[#allocation4 + $0x68] sm:$0xff] }
 0x27f   : > { %1907 = vmatprep.mubr.bf16.mxu1 %v1202_v57 }
 0x280   : > { %v2065_v22 = vpop.eup %2064  ;;  %v2673_v44 = vpop.permute.xlu0 %1147 }
 0x281   : > { %1049 = vadd.xlane.f32.xlu1 %v2063_v62  ;;  %1047 = vadd.xlane.f32.xlu0 %v2065_v22  ;;  %v1203_v8 = vpack.c.bf16 %v2063_v62, %v2065_v22  ;;  %v2647_v7 = vpop.eup %2066 }
 0x282   : > { %v2650_v12 = vpop.eup %2068  ;;  %v2671_v42 = vpop.permute.xlu1 %1152 }
 0x283   : > { %1908 = vmatmul.mubr.bf16.gmra.mxu1 %v1203_v8 }
 0x284   : > { %v2677_v30 = vpop.permute.xlu0 %1167 }
 0x285   : > { %1045 = vadd.xlane.f32.xlu1 %v2059_v3  ;;  %1043 = vadd.xlane.f32.xlu0 %v2061_v31  ;;  %v997_v3 = vld [vmem:[#allocation4 + $0x50] sm:$0xff]  ;;  %v998_v31 = vld [vmem:[#allocation4 + $0x58] sm:$0xff] }
 0x286   : > { %v2675_v46 = vpop.permute.xlu1 %1142  ;;  %v1013_v15 = vmul.f32 %v2613_v35, %v997_v3  ;;  %v1014_v62 = vmul.f32 %v2604_v17, %v998_v31  ;;  %v1002_v35 = vld [vmem:[#allocation4 + $0x78] sm:$0xff] }
 0x287   : > { %v1018_v40 = vmul.f32 %v2650_v12, %v1002_v35 }
 0x28a   : > { %v2679_v24 = vpop.permute.xlu1 %1162 }
 0x296   : > { %1172 = vperm.xlu1 %1981, %v2647_v7  }
 0x29b   : > { %1177 = vperm.xlu0 %1980, %v2650_v12   ;;  %v1086_v12 = vld [vmem:[#allocation5 + $0x10] sm:$0xff] }
 0x2e0   : > { %v1024_v53 = vpop.xlane.xlu0 %1023 }
 0x2e1   : > { %v1053_v54 = vadd.f32 %v1024_v53, %v1005_v49 }
 0x2e2   : > { %v1020_v29 = vpop.xlane.xlu1 %1019 }
 0x2e3   : > { %1070 = vst.msk [vmem:[#allocation4 + $0x10] sm:$0xff] %vm1067_vm4, %v1053_v54  ;;  %v1051_v28 = vadd.f32 %v1020_v29, %v1003_v56  ;;  %v1001_v54 = vld [vmem:[#allocation4 + $0x70] sm:$0xff] }
 0x2e4   : > { %v1017_v29 = vmul.f32 %v2647_v7, %v1001_v54  ;;  %v1093_v54 = vld [vmem:[#allocation5 + $0x48] sm:$0xff] }
 0x2e5   : > { %1068 = vst.msk [vmem:[#allocation4] sm:$0xff] %vm1067_vm4, %v1051_v28 }
 0x2e6   : > { %v1026_v61 = vpop.xlane.xlu1 %1025 }
 0x2e7   : > { %v1054_v18 = vadd.f32 %v1026_v61, %v1006_v59  ;;  %v999_v59 = vld [vmem:[#allocation4 + $0x60] sm:$0xff] }
 0x2e8   : > { %v1022_v34 = vpop.xlane.xlu0 %1021 }
 0x2e9   : > { %1071 = vst.msk [vmem:[#allocation4 + $0x18] sm:$0xff] %vm1067_vm4, %v1054_v18  ;;  %v1052_v14 = vadd.f32 %v1022_v34, %v1004_v60  ;;  %v1015_v18 = vmul.f32 %v2622_v41, %v999_v59  ;;  %v1016_v60 = vmul.f32 %v2616_v38, %v1000_v39  ;;  %v1085_v41 = vld [vmem:[#allocation5 + $0x8] sm:$0xff]  ;;  %v1183_v38 = vmul.f32 %v2657_v52, %v1087_v1  ;;  %v1091_v52 = vld [vmem:[#allocation5 + $0x38] sm:$0xff] }
 0x2eb   : > { %1069 = vst.msk [vmem:[#allocation4 + $0x8] sm:$0xff] %vm1067_vm4, %v1052_v14 }
 0x2ee   : > { %v1032_v27 = vpop.xlane.xlu0 %1031 }
 0x2ef   : > { %v1057_v19 = vadd.f32 %v1032_v27, %v1009_v55  ;;  %v1084_v55 = vld [vmem:[#allocation5] sm:$0xff]  ;;  %v1182_v27 = vmul.f32 %v2659_v36, %v1086_v12 }
 0x2f1   : > { %1074 = vst.msk [vmem:[#allocation4 + $0x30] sm:$0xff] %vm1067_vm4, %v1057_v19 }
 0x2f2   : > { %v1028_v2 = vpop.xlane.xlu0 %1027 }
 0x2f3   : > { %v1055_v33 = vadd.f32 %v1028_v2, %v1007_v6  ;;  %v1180_v6 = vmul.f32 %v2653_v13, %v1084_v55  ;;  %v1090_v13 = vld [vmem:[#allocation5 + $0x30] sm:$0xff] }
 0x2f5   : > { %1072 = vst.msk [vmem:[#allocation4 + $0x20] sm:$0xff] %vm1067_vm4, %v1055_v33 }
 0x2fa   : > { %v1034_v32 = vpop.xlane.xlu1 %1033 }
 0x2fb   : > { %v1058_v21 = vadd.f32 %v1034_v32, %v1010_v20  ;;  %v1181_v32 = vmul.f32 %v2655_v43, %v1085_v41 }
 0x2fd   : > { %1075 = vst.msk [vmem:[#allocation4 + $0x38] sm:$0xff] %vm1067_vm4, %v1058_v21 }
 0x2fe   : > { %v1030_v4 = vpop.xlane.xlu1 %1029 }
 0x2ff   : > { %v1056_v57 = vadd.f32 %v1030_v4, %v1008_v16  ;;  %v1088_v16 = vld [vmem:[#allocation5 + $0x20] sm:$0xff]  ;;  %v1186_v4 = vmul.f32 %v2667_v50, %v1090_v13 }
 0x300   : > { %v1184_v31 = vmul.f32 %v2663_v37, %v1088_v16  ;;  %v1092_v50 = vld [vmem:[#allocation5 + $0x40] sm:$0xff] }
 0x301   : > { %1073 = vst.msk [vmem:[#allocation4 + $0x28] sm:$0xff] %vm1067_vm4, %v1056_v57 }
 0x302   : > { %v1040_v22 = vpop.xlane.xlu0 %1039  ;;  %v1042_v8 = vpop.xlane.xlu1 %1041 }
 0x303   : > { %v1061_v23 = vadd.f32 %v1040_v22, %v1013_v15  ;;  %v1062_v47 = vadd.f32 %v1042_v8, %v1014_v62  ;;  %v1089_v15 = vld [vmem:[#allocation5 + $0x28] sm:$0xff]  ;;  %v1187_v62 = vmul.f32 %v2661_v5, %v1091_v52  ;;  %v1094_v8 = vld [vmem:[#allocation5 + $0x50] sm:$0xff]  ;;  %v1188_v5 = vmul.f32 %v2675_v46, %v1092_v50 }
 0x304   : > { %v1185_v9 = vmul.f32 %v2665_v45, %v1089_v15 }
 0x305   : > { %1078 = vst.msk [vmem:[#allocation4 + $0x50] sm:$0xff] %vm1067_vm4, %v1061_v23  ;;  %1079 = vst.msk [vmem:[#allocation4 + $0x58] sm:$0xff] %vm1067_vm4, %v1062_v47 }
 0x306   : > { %v1036_v49 = vpop.xlane.xlu0 %1035  ;;  %v1038_v53 = vpop.xlane.xlu1 %1037 }
 0x307   : > { %v1059_v56 = vadd.f32 %v1036_v49, %v1011_v0  ;;  %v1060_v17 = vadd.f32 %v1038_v53, %v1012_v48  ;;  %v1190_v0 = vmul.f32 %v2671_v42, %v1094_v8  ;;  %v1095_v48 = vld [vmem:[#allocation5 + $0x58] sm:$0xff] }
 0x308   : > { %v1191_v45 = vmul.f32 %v2669_v26, %v1095_v48 }
 0x309   : > { %1076 = vst.msk [vmem:[#allocation4 + $0x40] sm:$0xff] %vm1067_vm4, %v1059_v56  ;;  %1077 = vst.msk [vmem:[#allocation4 + $0x48] sm:$0xff] %vm1067_vm4, %v1060_v17  ;;  %v1098_v17 = vld [vmem:[#allocation5 + $0x70] sm:$0xff] }
 0x30a   : > { %v1048_v28 = vpop.xlane.xlu0 %1047  ;;  %v1050_v58 = vpop.xlane.xlu1 %1049 }
 0x30b   : > { %v1065_v61 = vadd.f32 %v1048_v28, %v1017_v29  ;;  %v1066_v25 = vadd.f32 %v1050_v58, %v1018_v40  ;;  %v1189_v40 = vmul.f32 %v2673_v44, %v1093_v54  ;;  %v1096_v58 = vld [vmem:[#allocation5 + $0x60] sm:$0xff] }
 0x30d   : > { %1082 = vst.msk [vmem:[#allocation4 + $0x70] sm:$0xff] %vm1067_vm4, %v1065_v61  ;;  %1083 = vst.msk [vmem:[#allocation4 + $0x78] sm:$0xff] %vm1067_vm4, %v1066_v25  ;;  %v1099_v61 = vld [vmem:[#allocation5 + $0x78] sm:$0xff] }
 0x30e   : > { %v1044_v34 = vpop.xlane.xlu0 %1043  ;;  %v1046_v14 = vpop.xlane.xlu1 %1045 }
 0x30f   : > { %v1063_v63 = vadd.f32 %v1044_v34, %v1015_v18  ;;  %v1064_v7 = vadd.f32 %v1046_v14, %v1016_v60  ;;  %v1192_v18 = vmul.f32 %v2679_v24, %v1096_v58  ;;  %v1097_v34 = vld [vmem:[#allocation5 + $0x68] sm:$0xff] }
 0x310   : > { %v1193_v12 = vmul.f32 %v2677_v30, %v1097_v34 }
 0x311   : > { %1080 = vst.msk [vmem:[#allocation4 + $0x60] sm:$0xff] %vm1067_vm4, %v1063_v63  ;;  %1081 = vst.msk [vmem:[#allocation4 + $0x68] sm:$0xff] %vm1067_vm4, %v1064_v7 }
 0x312   : > { %v1173_v29 = vpop.permute.xlu1 %1172 }
 0x313   : > { %v1194_v59 = vmul.f32 %v1173_v29, %v1098_v17 }
 0x316   : > { %v1178_v25 = vpop.permute.xlu0 %1177 }
 0x317   : > { %v1195_v44 = vmul.f32 %v1178_v25, %v1099_v61 }
 0x322   : > { %v1897_v19 = vpop.f32.mrf.mxu1 }
 0x323   : > { %v1351_v2 = vadd.f32 %v1897_v19, %v1182_v27 }
 0x324   : > { %v1286_v33 = vpop.f32.mrf.mxu1 }
 0x325   : > { %1367 = vst.msk [vmem:[#allocation5 + $0x10] sm:$0xff] %vm601_vm3, %v1351_v2  ;;  %v1349_v10 = vadd.f32 %v1286_v33, %v1180_v6 }
 0x326   : > { %v1898_v20 = vpop.f32.mrf.mxu1 }
 0x327   : > { %1365 = vst.msk [vmem:[#allocation5] sm:$0xff] %vm601_vm3, %v1349_v10  ;;  %v1352_v51 = vadd.f32 %v1898_v20, %v1183_v38 }
 0x328   : > { %v1289_v21 = vpop.f32.mrf.mxu1 }
 0x329   : > { %1368 = vst.msk [vmem:[#allocation5 + $0x18] sm:$0xff] %vm601_vm3, %v1352_v51  ;;  %v1350_v36 = vadd.f32 %v1289_v21, %v1181_v32 }
 0x32b   : > { %1366 = vst.msk [vmem:[#allocation5 + $0x8] sm:$0xff] %vm601_vm3, %v1350_v36 }
 0x333   : > { %v1901_v3 = vpop.f32.mrf.mxu1 }
 0x334   : > { %v1355_v57 = vadd.f32 %v1901_v3, %v1186_v4 }
 0x335   : > { %v1302_v43 = vpop.f32.mrf.mxu1 }
 0x336   : > { %1371 = vst.msk [vmem:[#allocation5 + $0x30] sm:$0xff] %vm601_vm3, %v1355_v57  ;;  %v1353_v22 = vadd.f32 %v1302_v43, %v1184_v31 }
 0x337   : > { %v1902_v11 = vpop.f32.mrf.mxu1 }
 0x338   : > { %1369 = vst.msk [vmem:[#allocation5 + $0x20] sm:$0xff] %vm601_vm3, %v1353_v22  ;;  %v1356_v23 = vadd.f32 %v1902_v11, %v1187_v62 }
 0x339   : > { %v1305_v47 = vpop.f32.mrf.mxu1 }
 0x33a   : > { %1372 = vst.msk [vmem:[#allocation5 + $0x38] sm:$0xff] %vm601_vm3, %v1356_v23  ;;  %v1354_v37 = vadd.f32 %v1305_v47, %v1185_v9 }
 0x33b   : > { %v1905_v49 = vpop.f32.mrf.mxu1 }
 0x33c   : > { %1370 = vst.msk [vmem:[#allocation5 + $0x28] sm:$0xff] %vm601_vm3, %v1354_v37  ;;  %v1359_v53 = vadd.f32 %v1905_v49, %v1190_v0 }
 0x33d   : > { %v1318_v35 = vpop.f32.mrf.mxu1 }
 0x33e   : > { %1375 = vst.msk [vmem:[#allocation5 + $0x50] sm:$0xff] %vm601_vm3, %v1359_v53  ;;  %v1357_v56 = vadd.f32 %v1318_v35, %v1188_v5 }
 0x33f   : > { %v1906_v42 = vpop.f32.mrf.mxu1 }
 0x340   : > { %1373 = vst.msk [vmem:[#allocation5 + $0x40] sm:$0xff] %vm601_vm3, %v1357_v56  ;;  %v1360_v28 = vadd.f32 %v1906_v42, %v1191_v45 }
 0x341   : > { %v1321_v46 = vpop.f32.mrf.mxu1 }
 0x342   : > { %1376 = vst.msk [vmem:[#allocation5 + $0x58] sm:$0xff] %vm601_vm3, %v1360_v28  ;;  %v1358_v39 = vadd.f32 %v1321_v46, %v1189_v40 }
 0x343   : > { %v1909_v26 = vpop.f32.mrf.mxu1 }
 0x344   : > { %1374 = vst.msk [vmem:[#allocation5 + $0x48] sm:$0xff] %vm601_vm3, %v1358_v39  ;;  %v1363_v60 = vadd.f32 %v1909_v26, %v1194_v59 }
 0x345   : > { %v1334_v14 = vpop.f32.mrf.mxu1 }
 0x346   : > { %1379 = vst.msk [vmem:[#allocation5 + $0x70] sm:$0xff] %vm601_vm3, %v1363_v60  ;;  %v1361_v63 = vadd.f32 %v1334_v14, %v1192_v18 }
 0x347   : > { %v1910_v7 = vpop.f32.mrf.mxu1 }
 0x348   : > { %1377 = vst.msk [vmem:[#allocation5 + $0x60] sm:$0xff] %vm601_vm3, %v1361_v63  ;;  %v1364_v55 = vadd.f32 %v1910_v7, %v1195_v44  ;;  %1400 = sbr.rel (%p1757_p10) target bundleno = 1016 (0x3f8), region = 40 }
 0x349   : > { %v1337_v27 = vpop.f32.mrf.mxu1 }
 0x34a   : > { %1380 = vst.msk [vmem:[#allocation5 + $0x78] sm:$0xff] %vm601_vm3, %v1364_v55  ;;  %v1362_v1 = vadd.f32 %v1337_v27, %v1193_v12 }
 0x34c   : > { %1378 = vst.msk [vmem:[#allocation5 + $0x68] sm:$0xff] %vm601_vm3, %v1362_v1 }
 0x34d   : > { %v1403_v24 = vld [vmem:[#allocation4 + $0x10] sm:$0xff]  ;;  %v1401_v19 = vld [vmem:[#allocation4] sm:$0xff]  ;;  %v1404_v6 = vld [vmem:[#allocation4 + $0x18] sm:$0xff]  ;;  %v2163_v2 = vmov 0  }
 0x34e   : > { %2071 = vset.pattern.permute.xlu1 %v2163_v2  ;;  %2070 = vset.pattern.permute.xlu0 %v2163_v2  ;;  %2072 = vrcp.f32 %v1403_v24  ;;  %v1402_v30 = vld [vmem:[#allocation4 + $0x8] sm:$0xff]  ;;  %v1405_v33 = vld [vmem:[#allocation4 + $0x20] sm:$0xff]  ;;  %v1408_v38 = vld [vmem:[#allocation4 + $0x38] sm:$0xff] }
 0x34f   : > { %2074 = vrcp.f32 %v1401_v19  ;;  %v1406_v41 = vld [vmem:[#allocation4 + $0x28] sm:$0xff]  ;;  %v1407_v10 = vld [vmem:[#allocation4 + $0x30] sm:$0xff]  ;;  %v1409_v32 = vld [vmem:[#allocation4 + $0x40] sm:$0xff] }
 0x350   : > { %2076 = vrcp.f32 %v1404_v6  ;;  %v1410_v20 = vld [vmem:[#allocation4 + $0x48] sm:$0xff]  ;;  %v1412_v13 = vld [vmem:[#allocation4 + $0x58] sm:$0xff]  ;;  %v1411_v4 = vld [vmem:[#allocation4 + $0x50] sm:$0xff] }
 0x351   : > { %2078 = vrcp.f32 %v1402_v30  ;;  %v1414_v3 = vld [vmem:[#allocation4 + $0x68] sm:$0xff]  ;;  %v1413_v57 = vld [vmem:[#allocation4 + $0x60] sm:$0xff]  ;;  %v1416_v43 = vld [vmem:[#allocation4 + $0x78] sm:$0xff] }
 0x352   : > { %2080 = vrcp.f32 %v1406_v41  ;;  %v1415_v22 = vld [vmem:[#allocation4 + $0x70] sm:$0xff]  ;;  %v1433_v49 = vld [vmem:[#allocation5] sm:$0xff]  ;;  %v1436_v45 = vld [vmem:[#allocation5 + $0x18] sm:$0xff] }
 0x353   : > { %2082 = vrcp.f32 %v1405_v33  ;;  %v1435_v48 = vld [vmem:[#allocation5 + $0x10] sm:$0xff]  ;;  %v1434_v56 = vld [vmem:[#allocation5 + $0x8] sm:$0xff]  ;;  %v1437_v58 = vld [vmem:[#allocation5 + $0x20] sm:$0xff] }
 0x354   : > { %2084 = vrcp.f32 %v1408_v38  ;;  %v1438_v28 = vld [vmem:[#allocation5 + $0x28] sm:$0xff]  ;;  %v1440_v25 = vld [vmem:[#allocation5 + $0x38] sm:$0xff]  ;;  %v1439_v26 = vld [vmem:[#allocation5 + $0x30] sm:$0xff] }
 0x355   : > { %2086 = vrcp.f32 %v1407_v10  ;;  %v1442_v44 = vld [vmem:[#allocation5 + $0x48] sm:$0xff]  ;;  %v1441_v63 = vld [vmem:[#allocation5 + $0x40] sm:$0xff]  ;;  %v1444_v1 = vld [vmem:[#allocation5 + $0x58] sm:$0xff] }
 0x356   : > { %2088 = vrcp.f32 %v1410_v20  ;;  %v1443_v24 = vld [vmem:[#allocation5 + $0x50] sm:$0xff]  ;;  %v1446_v41 = vld [vmem:[#allocation5 + $0x68] sm:$0xff]  ;;  %v1445_v33 = vld [vmem:[#allocation5 + $0x60] sm:$0xff] }
 0x357   : > { %2090 = vrcp.f32 %v1409_v32 }
 0x358   : > { %2092 = vrcp.f32 %v1412_v13 }
 0x359   : > { %2094 = vrcp.f32 %v1411_v4 }
 0x35a   : > { %2096 = vrcp.f32 %v1414_v3 }
 0x35b   : > { %v2073_v51 = vpop.eup %2072  ;;  %2098 = vrcp.f32 %v1413_v57 }
 0x35c   : > { %v2075_v21 = vpop.eup %2074  ;;  %1461 = vperm.xlu1 %2071, %v2073_v51   ;;  %2100 = vrcp.f32 %v1416_v43  ;;  %v1448_v51 = vld [vmem:[#allocation5 + $0x78] sm:$0xff] }
 0x35d   : > { %v2077_v36 = vpop.eup %2076  ;;  %1451 = vperm.xlu0 %2070, %v2075_v21   ;;  %2102 = vrcp.f32 %v1415_v22  ;;  %v1447_v21 = vld [vmem:[#allocation5 + $0x70] sm:$0xff] }
 0x35e   : > { %v2079_v16 = vpop.eup %2078 }
 0x35f   : > { %v2081_v52 = vpop.eup %2080 }
 0x360   : > { %1466 = vperm.xlu1 %2071, %v2077_v36   ;;  %v2083_v31 = vpop.eup %2082 }
 0x361   : > { %1456 = vperm.xlu0 %2070, %v2079_v16   ;;  %v2085_v15 = vpop.eup %2084 }
 0x362   : > { %v2087_v62 = vpop.eup %2086 }
 0x363   : > { %v2089_v8 = vpop.eup %2088 }
 0x364   : > { %1476 = vperm.xlu1 %2071, %v2081_v52   ;;  %v2091_v11 = vpop.eup %2090 }
 0x365   : > { %1471 = vperm.xlu0 %2070, %v2083_v31   ;;  %v2093_v9 = vpop.eup %2092 }
 0x366   : > { %v2095_v23 = vpop.eup %2094 }
 0x367   : > { %v2097_v50 = vpop.eup %2096 }
 0x368   : > { %1486 = vperm.xlu1 %2071, %v2085_v15   ;;  %v2099_v47 = vpop.eup %2098 }
 0x369   : > { %1481 = vperm.xlu0 %2070, %v2087_v62   ;;  %v2101_v0 = vpop.eup %2100 }
 0x36a   : > { %v2103_v37 = vpop.eup %2102 }
 0x36c   : > { %1496 = vperm.xlu1 %2071, %v2089_v8  }
 0x36d   : > { %1491 = vperm.xlu0 %2070, %v2091_v11  }
 0x370   : > { %1506 = vperm.xlu1 %2071, %v2093_v9  }
 0x371   : > { %1501 = vperm.xlu0 %2070, %v2095_v23  }
 0x374   : > { %1516 = vperm.xlu1 %2071, %v2097_v50  }
 0x375   : > { %1511 = vperm.xlu0 %2070, %v2099_v47  }
 0x378   : > { %1526 = vperm.xlu1 %2071, %v2101_v0  }
 0x379   : > { %1521 = vperm.xlu0 %2070, %v2103_v37  }
 0x3d7   : > { %v1462_v5 = vpop.permute.xlu1 %1461 }
 0x3d8   : > { %v1531_v53 = vmul.f32 %v1462_v5, %v1435_v48  ;;  %v1452_v54 = vpop.permute.xlu0 %1451 }
 0x3d9   : > { %v1529_v35 = vmul.f32 %v1452_v54, %v1433_v49 }
 0x3da   : > { %1547 = vst.msk [vmem:[%s2237_s7 + $0x10] sm:$0xff] %vm601_vm3, %v1531_v53 }
 0x3db   : > { %1545 = vst.msk [vmem:[%s2237_s7] sm:$0xff] %vm601_vm3, %v1529_v35  ;;  %v1467_v17 = vpop.permute.xlu1 %1466 }
 0x3dc   : > { %v1532_v29 = vmul.f32 %v1467_v17, %v1436_v45  ;;  %v1457_v42 = vpop.permute.xlu0 %1456 }
 0x3dd   : > { %v1530_v40 = vmul.f32 %v1457_v42, %v1434_v56 }
 0x3de   : > { %1548 = vst.msk [vmem:[%s2237_s7 + $0x18] sm:$0xff] %vm601_vm3, %v1532_v29 }
 0x3df   : > { %1546 = vst.msk [vmem:[%s2237_s7 + $0x8] sm:$0xff] %vm601_vm3, %v1530_v40  ;;  %v1477_v46 = vpop.permute.xlu1 %1476 }
 0x3e0   : > { %v1534_v59 = vmul.f32 %v1477_v46, %v1438_v28  ;;  %v1472_v39 = vpop.permute.xlu0 %1471 }
 0x3e1   : > { %v1533_v61 = vmul.f32 %v1472_v39, %v1437_v58 }
 0x3e2   : > { %1550 = vst.msk [vmem:[%s2237_s7 + $0x28] sm:$0xff] %vm601_vm3, %v1534_v59 }
 0x3e3   : > { %1549 = vst.msk [vmem:[%s2237_s7 + $0x20] sm:$0xff] %vm601_vm3, %v1533_v61  ;;  %v1487_v18 = vpop.permute.xlu1 %1486 }
 0x3e4   : > { %v1536_v60 = vmul.f32 %v1487_v18, %v1440_v25  ;;  %v1482_v34 = vpop.permute.xlu0 %1481 }
 0x3e5   : > { %v1535_v14 = vmul.f32 %v1482_v34, %v1439_v26 }
 0x3e6   : > { %1552 = vst.msk [vmem:[%s2237_s7 + $0x38] sm:$0xff] %vm601_vm3, %v1536_v60 }
 0x3e7   : > { %1551 = vst.msk [vmem:[%s2237_s7 + $0x30] sm:$0xff] %vm601_vm3, %v1535_v14  ;;  %v1497_v7 = vpop.permute.xlu1 %1496 }
 0x3e8   : > { %v1538_v12 = vmul.f32 %v1497_v7, %v1442_v44  ;;  %v1492_v55 = vpop.permute.xlu0 %1491 }
 0x3e9   : > { %v1537_v27 = vmul.f32 %v1492_v55, %v1441_v63 }
 0x3ea   : > { %1554 = vst.msk [vmem:[%s2237_s7 + $0x48] sm:$0xff] %vm601_vm3, %v1538_v12 }
 0x3eb   : > { %1553 = vst.msk [vmem:[%s2237_s7 + $0x40] sm:$0xff] %vm601_vm3, %v1537_v27  ;;  %v1507_v19 = vpop.permute.xlu1 %1506 }
 0x3ec   : > { %v1540_v6 = vmul.f32 %v1507_v19, %v1444_v1  ;;  %v1502_v2 = vpop.permute.xlu0 %1501 }
 0x3ed   : > { %v1539_v30 = vmul.f32 %v1502_v2, %v1443_v24 }
 0x3ee   : > { %1556 = vst.msk [vmem:[%s2237_s7 + $0x58] sm:$0xff] %vm601_vm3, %v1540_v6 }
 0x3ef   : > { %1555 = vst.msk [vmem:[%s2237_s7 + $0x50] sm:$0xff] %vm601_vm3, %v1539_v30  ;;  %v1517_v38 = vpop.permute.xlu1 %1516 }
 0x3f0   : > { %v1542_v10 = vmul.f32 %v1517_v38, %v1446_v41  ;;  %v1512_v20 = vpop.permute.xlu0 %1511 }
 0x3f1   : > { %v1541_v32 = vmul.f32 %v1512_v20, %v1445_v33 }
 0x3f2   : > { %1558 = vst.msk [vmem:[%s2237_s7 + $0x68] sm:$0xff] %vm601_vm3, %v1542_v10 }
 0x3f3   : > { %1557 = vst.msk [vmem:[%s2237_s7 + $0x60] sm:$0xff] %vm601_vm3, %v1541_v32  ;;  %v1527_v36 = vpop.permute.xlu1 %1526 }
 0x3f4   : > { %v1544_v13 = vmul.f32 %v1527_v36, %v1448_v51  ;;  %v1522_v16 = vpop.permute.xlu0 %1521 }
 0x3f5   : > { %v1543_v4 = vmul.f32 %v1522_v16, %v1447_v21 }
 0x3f6   : > { %1560 = vst.msk [vmem:[%s2237_s7 + $0x78] sm:$0xff] %vm601_vm3, %v1544_v13 }
 0x3f7   : > { %1559 = vst.msk [vmem:[%s2237_s7 + $0x70] sm:$0xff] %vm601_vm3, %v1543_v4 }
 0x3f8 PF: > { %s13_s18 = sadd.s32 1, %s2158_s18   ;;  %s2801_s12 = smov %s2146_s15 }
 0x3f9   : > { %p10_p11 = scmp.ge.s32.totalorder %s13_s18, 26   ;;  %s2802_s13 = smov %s2150_s16 }
 0x3fa   : > { %s2803_s14 = smov %s2154_s17  ;;  %s2804_s15 = smov %s2808_s19 }
 0x3fb   : > { %s2805_s16 = smov %s2812_s20  ;;  %s2806_s17 = smov %s2816_s21 }
 0x3fc   :  { %12 = sbr.rel (!%p10_p11) target bundleno = 4 (0x4), region = 76 }

</bundles_post_ra>
